<compile_context>
chip_gen: v7x
topology: tpu7x:2x2x1
jax: 0.10.0
libtpu: 0.0.40
codegen_flags: <defaults>
</compile_context>

<pallas_src>
import functools
import math

import jax
import jax.numpy as jnp
from jax import lax
from jax.experimental import pallas as pl
from jax.experimental.pallas import tpu as pltpu


# ----------------------------- fused Pallas kernel --------------------------

def _encoder_layer_kernel(x_q_ref, x_kv_ref, qm_ref, km_ref,
                          wq_ref, wk_ref, wv_ref, wp_ref,
                          g1_ref, b1_ref, w1_ref, fb1_ref, w2_ref, fb2_ref,
                          g2_ref, b2_ref,
                          out_ref, attw_ref,
                          k_sc, v_sc,
                          *, n_heads, d_k, causal):
    t = pl.program_id(1)                       # query-tile index
    tq = x_q_ref.shape[1]
    S = x_kv_ref.shape[1]
    D = x_q_ref.shape[2]
    scale = jnp.float32(d_k ** (-0.5))
    neg_inf = jnp.float32(-jnp.inf)

    # ---- once per batch element: K/V projections into head-major bf16 scratch
    @pl.when(t == 0)
    def _():
        x_kv = x_kv_ref[0].astype(jnp.bfloat16)                    # (S, D)
        for h in range(n_heads):                                   # static unroll
            k_sc[h] = jnp.dot(x_kv, wk_ref[h],
                              preferred_element_type=jnp.float32
                              ).astype(jnp.bfloat16)               # (S, dk)
            v_sc[h] = jnp.dot(x_kv, wv_ref[h],
                              preferred_element_type=jnp.float32
                              ).astype(jnp.bfloat16)               # (S, dk)

    x_q = x_q_ref[0]                          # (tq, D) f32, kept for residual
    x_q_bf = x_q.astype(jnp.bfloat16)
    qm = qm_ref[0]                            # (tq, 1)  1.0 -> query is padding
    km = km_ref[0]                            # (1, S)   1.0 -> key is padding

    # Additive mask bias, hoisted out of the head loop (one (tq,S) select total).
    bias = jnp.where(jnp.logical_or(qm > 0.0, km > 0.0), neg_inf, 0.0)  # (tq, S)
    if causal:
        row = lax.broadcasted_iota(jnp.int32, (tq, S), 0) + t * tq
        col = lax.broadcasted_iota(jnp.int32, (tq, S), 1)
        bias = jnp.where(col > row, neg_inf, bias)

    acc = jnp.zeros((tq, D), jnp.float32)     # lane-dense attention-out accum
    for h in range(n_heads):                  # static unrolled head loop
        q_h = jnp.dot(x_q_bf, wq_ref[h],
                      preferred_element_type=jnp.float32)          # (tq, dk)
        # scores = q_h @ k_h^T  (contract over dk, no explicit transpose)
        s = lax.dot_general(q_h.astype(jnp.bfloat16), k_sc[h],
                            (((1,), (1,)), ((), ())),
                            preferred_element_type=jnp.float32)    # (tq, S)
        s = s * scale + bias

        # softmax; fully-masked rows -> NaN in attw (torch), exact 0 for PV.
        m = jnp.max(s, axis=-1, keepdims=True)
        m_safe = jnp.where(m == neg_inf, 0.0, m)
        e = jnp.exp(s - m_safe)
        denom = jnp.sum(e, axis=-1, keepdims=True)
        ok = denom > 0.0
        inv = jnp.where(ok, pl.reciprocal(denom, approx=True), 0.0)
        p = e * inv                                                # 0 on masked rows
        attw_ref[0, h] = p + jnp.where(ok, 0.0, jnp.float32(jnp.nan))

        ctx_h = jnp.dot(p.astype(jnp.bfloat16), v_sc[h],
                        preferred_element_type=jnp.float32)        # (tq, dk)
        # accumulate the output projection per head (no concat of narrow tiles)
        acc = acc + jnp.dot(ctx_h.astype(jnp.bfloat16), wp_ref[h],
                            preferred_element_type=jnp.float32)    # (tq, D)

    # Fused epilogue 1: residual add + LayerNorm (ln1).
    y1 = acc + x_q
    mu1 = jnp.mean(y1, axis=-1, keepdims=True)
    var1 = jnp.mean((y1 - mu1) ** 2, axis=-1, keepdims=True)
    sa_norm = (y1 - mu1) * lax.rsqrt(var1 + 1e-5) * g1_ref[...] + b1_ref[...]

    # Fused FeedForward (Linear -> ReLU -> Linear) + residual + LayerNorm (ln2).
    # TODO(synk): dropout inside FeedForward / after attention is identity
    #             (eval-mode semantics).
    hdn = jnp.dot(sa_norm.astype(jnp.bfloat16), w1_ref[...],
                  preferred_element_type=jnp.float32) + fb1_ref[...]
    hdn = jnp.maximum(hdn, 0.0)
    ff = jnp.dot(hdn.astype(jnp.bfloat16), w2_ref[...],
                 preferred_element_type=jnp.float32) + fb2_ref[...]
    y2 = ff + sa_norm
    mu2 = jnp.mean(y2, axis=-1, keepdims=True)
    var2 = jnp.mean((y2 - mu2) ** 2, axis=-1, keepdims=True)
    out_ref[0] = (y2 - mu2) * lax.rsqrt(var2 + 1e-5) * g2_ref[...] + b2_ref[...]


def _pick_tq(S, target=512):
    """Largest multiple-of-8 divisor of S that is <= target (else full S)."""
    if S % 8 != 0:
        return S
    tq = min(S, target)
    tq -= tq % 8
    while S % tq:
        tq -= 8
    return max(tq, 8)


def encoder_layer_forward(x, src_padding_mask, p, n_heads, causal=False, tq=None):
    """One fused pallas_call implementing EncoderLayer.forward.

    Returns (out, attention_weights_inter) just like the PyTorch module.
    """
    B, S, D = x.shape
    H = n_heads
    dk = D // H
    dff = p["w1"].shape[1]

    if tq is None:
        tq = _pick_tq(S)
    assert S % tq == 0 and (tq % 8 == 0 or tq == S), "tq must tile S in 8-multiples"
    T = S // tq

    bf = lambda w: w.astype(jnp.bfloat16)
    # Head-blocked, bf16 weights (one-time reshape/cast outside the kernel).
    wq_hb = bf(p["wq"].reshape(D, H, dk).transpose(1, 0, 2))   # (H, D, dk)
    wk_hb = bf(p["wk"].reshape(D, H, dk).transpose(1, 0, 2))   # (H, D, dk)
    wv_hb = bf(p["wv"].reshape(D, H, dk).transpose(1, 0, 2))   # (H, D, dk)
    wp_hb = bf(p["wp"].reshape(H, dk, D))                      # (H, dk, D)
    w1_bf = bf(p["w1"])
    w2_bf = bf(p["w2"])

    mask_f = src_padding_mask.astype(jnp.float32)
    qmask_col = mask_f.reshape(B, S, 1)     # query-padding, broadcast over keys
    kmask_row = mask_f.reshape(B, 1, S)     # key-padding, broadcast over queries

    kern = functools.partial(_encoder_layer_kernel,
                             n_heads=H, d_k=dk, causal=causal)

    out, attw = pl.pallas_call(
        kern,
        grid=(B, T),
        in_specs=[
            pl.BlockSpec((1, tq, D), lambda b, t: (b, t, 0)),     # x (query tile)
            pl.BlockSpec((1, S, D), lambda b, t: (b, 0, 0)),      # x (full, K/V)
            pl.BlockSpec((1, tq, 1), lambda b, t: (b, t, 0)),     # query pad mask
            pl.BlockSpec((1, 1, S), lambda b, t: (b, 0, 0)),      # key pad mask
            pl.BlockSpec((H, D, dk), lambda b, t: (0, 0, 0)),     # wq (head-blocked)
            pl.BlockSpec((H, D, dk), lambda b, t: (0, 0, 0)),     # wk
            pl.BlockSpec((H, D, dk), lambda b, t: (0, 0, 0)),     # wv
            pl.BlockSpec((H, dk, D), lambda b, t: (0, 0, 0)),     # wp
            pl.BlockSpec((1, D), lambda b, t: (0, 0)),            # ln1 gamma
            pl.BlockSpec((1, D), lambda b, t: (0, 0)),            # ln1 beta
            pl.BlockSpec((D, dff), lambda b, t: (0, 0)),          # ffn w1
            pl.BlockSpec((1, dff), lambda b, t: (0, 0)),          # ffn b1
            pl.BlockSpec((dff, D), lambda b, t: (0, 0)),          # ffn w2
            pl.BlockSpec((1, D), lambda b, t: (0, 0)),            # ffn b2
            pl.BlockSpec((1, D), lambda b, t: (0, 0)),            # ln2 gamma
            pl.BlockSpec((1, D), lambda b, t: (0, 0)),            # ln2 beta
        ],
        out_specs=(
            pl.BlockSpec((1, tq, D), lambda b, t: (b, t, 0)),
            pl.BlockSpec((1, H, tq, S), lambda b, t: (b, 0, t, 0)),
        ),
        out_shape=(
            jax.ShapeDtypeStruct((B, S, D), jnp.float32),
            jax.ShapeDtypeStruct((B, H, S, S), jnp.float32),
        ),
        scratch_shapes=[
            pltpu.VMEM((H, S, dk), jnp.bfloat16),   # K, head-major, per batch
            pltpu.VMEM((H, S, dk), jnp.bfloat16),   # V, head-major, per batch
        ],
        compiler_params=pltpu.CompilerParams(
            dimension_semantics=("parallel", "arbitrary"),
            vmem_limit_bytes=48 * 1024 * 1024),     # sized for v7x's 64 MiB VMEM
    )(x, x, qmask_col, kmask_row, wq_hb, wk_hb, wv_hb, wp_hb,
      p["ln1_g"].reshape(1, D), p["ln1_b"].reshape(1, D),
      w1_bf, p["b1"].reshape(1, dff), w2_bf, p["b2"].reshape(1, D),
      p["ln2_g"].reshape(1, D), p["ln2_b"].reshape(1, D))
    return out, attw


# --------------------------- params & pure-JAX reference --------------------

def _xavier(key, shape, gain=1.0):
    fan_in, fan_out = shape
    a = gain * math.sqrt(6.0 / (fan_in + fan_out))
    return jax.random.uniform(key, shape, jnp.float32, -a, a)


def init_encoder_layer_params(key, d_model, d_ff):
    ks = jax.random.split(key, 6)
    return {
        "wq": _xavier(ks[0], (d_model, d_model)),
        "wk": _xavier(ks[1], (d_model, d_model)),
        "wv": _xavier(ks[2], (d_model, d_model)),
        "wp": _xavier(ks[3], (d_model, d_model)),
        "w1": _xavier(ks[4], (d_model, d_ff)),
        "b1": jnp.zeros((d_ff,), jnp.float32),
        "w2": _xavier(ks[5], (d_ff, d_model)),
        "b2": jnp.zeros((d_model,), jnp.float32),
        "ln1_g": jnp.ones((d_model,), jnp.float32),
        "ln1_b": jnp.zeros((d_model,), jnp.float32),
        "ln2_g": jnp.ones((d_model,), jnp.float32),
        "ln2_b": jnp.zeros((d_model,), jnp.float32),
    }


def encoder_layer_reference(x, pad_mask, p, n_heads, causal=False):
    """Pure-JAX mirror of the PyTorch EncoderLayer forward (for validation)."""
    B, S, D = x.shape
    H, dk = n_heads, D // n_heads
    hp = lax.Precision.HIGHEST

    def split(y):
        return y.reshape(B, S, H, dk).transpose(0, 2, 1, 3)

    q = split(jnp.dot(x, p["wq"], precision=hp))
    k = split(jnp.dot(x, p["wk"], precision=hp))
    v = split(jnp.dot(x, p["wv"], precision=hp))
    s = jnp.einsum("bhqd,bhkd->bhqk", q, k, precision=hp) * dk ** (-0.5)
    neg_inf = jnp.float32(-jnp.inf)
    s = jnp.where(pad_mask[:, None, :, None], neg_inf, s)   # query padding
    s = jnp.where(pad_mask[:, None, None, :], neg_inf, s)   # key padding
    if causal:
        tri = jnp.tril(jnp.ones((S, S), jnp.float32))
        s = jnp.where(tri == 0, neg_inf, s)
    w_inter = jax.nn.softmax(s, axis=-1)
    w = jnp.nan_to_num(w_inter, nan=0.0)
    att = jnp.einsum("bhqk,bhkd->bhqd", w, v, precision=hp)
    att = att.transpose(0, 2, 1, 3).reshape(B, S, D)
    att = jnp.dot(att, p["wp"], precision=hp)

    def ln(y, g, b):
        mu = y.mean(-1, keepdims=True)
        var = ((y - mu) ** 2).mean(-1, keepdims=True)
        return (y - mu) * lax.rsqrt(var + 1e-5) * g + b

    sa_norm = ln(att + x, p["ln1_g"], p["ln1_b"])
    hdn = jnp.maximum(jnp.dot(sa_norm, p["w1"], precision=hp) + p["b1"], 0.0)
    ff = jnp.dot(hdn, p["w2"], precision=hp) + p["b2"]
    out = ln(ff + sa_norm, p["ln2_g"], p["ln2_b"])
    return out, w_inter


# --------------------------------- main --------------------------------------

if __name__ == "__main__":
    B, S, D, H, DFF = 2, 16, 32, 4, 64
    TQ = 8   # exercises the query-tiling path (grid = (B, S//TQ) = (2, 2))

    key = jax.random.PRNGKey(0)
    k_p, k_x = jax.random.split(key)
    params = init_encoder_layer_params(k_p, D, DFF)
    x = jax.random.normal(k_x, (B, S, D), jnp.float32)

    # deterministic padding mask (True -> padded position); batch 0 has a
    # fully-padded query row in the last tile to exercise the NaN path.
    pad = jnp.zeros((B, S), jnp.bool_)
    pad = pad.at[0, -3:].set(True).at[1, -1].set(True)

    out, attw = encoder_layer_forward(x, pad, params, n_heads=H,
                                      causal=False, tq=TQ)
    out, attw = jax.block_until_ready((out, attw))

    ref_out, ref_attw = encoder_layer_reference(x, pad, params, H, causal=False)

    assert out.shape == (B, S, D)
    assert attw.shape == (B, H, S, S)
    assert bool(jnp.all(jnp.isfinite(out)))
    # bf16 MXU operands (f32 accumulation) vs. f32 HIGHEST reference: loose tol.
    assert bool(jnp.allclose(out, ref_out, atol=5e-2, rtol=5e-2))
    # padded-query rows are NaN by construction (torch semantics) -> compare
    # the NaN-zeroed weights, and check the NaN pattern matches.
    assert bool(jnp.array_equal(jnp.isnan(attw), jnp.isnan(ref_attw)))
    assert bool(jnp.allclose(jnp.nan_to_num(attw), jnp.nan_to_num(ref_attw),
                             atol=3e-2, rtol=3e-2))
    print("KERNEL_OK")
</pallas_src>

<mosaic_0001>
module attributes {stable_mosaic.version = 11 : i64} {
  func.func @_encoder_layer_kernel(%arg0: i32, %arg1: i32, %arg2: memref<1x8x32xf32, #tpu.memory_space<vmem>>, %arg3: memref<1x16x32xf32, #tpu.memory_space<vmem>>, %arg4: memref<1x8x1xf32, #tpu.memory_space<vmem>>, %arg5: memref<1x1x16xf32, #tpu.memory_space<vmem>>, %arg6: memref<4x32x8xbf16, #tpu.memory_space<vmem>>, %arg7: memref<4x32x8xbf16, #tpu.memory_space<vmem>>, %arg8: memref<4x32x8xbf16, #tpu.memory_space<vmem>>, %arg9: memref<4x8x32xbf16, #tpu.memory_space<vmem>>, %arg10: memref<1x32xf32, #tpu.memory_space<vmem>>, %arg11: memref<1x32xf32, #tpu.memory_space<vmem>>, %arg12: memref<32x64xbf16, #tpu.memory_space<vmem>>, %arg13: memref<1x64xf32, #tpu.memory_space<vmem>>, %arg14: memref<64x32xbf16, #tpu.memory_space<vmem>>, %arg15: memref<1x32xf32, #tpu.memory_space<vmem>>, %arg16: memref<1x32xf32, #tpu.memory_space<vmem>>, %arg17: memref<1x32xf32, #tpu.memory_space<vmem>>, %arg18: memref<1x8x32xf32, #tpu.memory_space<vmem>>, %arg19: memref<1x4x8x16xf32, #tpu.memory_space<vmem>>, %arg20: memref<4x16x8xbf16, #tpu.memory_space<vmem>>, %arg21: memref<4x16x8xbf16, #tpu.memory_space<vmem>>) attributes {dimension_semantics = [#tpu.dimension_semantics<parallel>, #tpu.dimension_semantics<arbitrary>], iteration_bounds = array<i64: 2, 2>, scalar_prefetch = 0 : i64, scratch_operands = 2 : i64, tpu.core_type = #tpu.core_type<tc>, window_params = [{transform_indices = @transform_0, window_bounds = array<i64: 1, 8, 32>}, {transform_indices = @transform_1, window_bounds = array<i64: 1, 16, 32>}, {transform_indices = @transform_2, window_bounds = array<i64: 1, 8, 1>}, {transform_indices = @transform_3, window_bounds = array<i64: 1, 1, 16>}, {pipeline_mode = #tpu.pipeline_mode<synchronous>, transform_indices = @transform_4, window_bounds = array<i64: 4, 32, 8>}, {pipeline_mode = #tpu.pipeline_mode<synchronous>, transform_indices = @transform_5, window_bounds = array<i64: 4, 32, 8>}, {pipeline_mode = #tpu.pipeline_mode<synchronous>, transform_indices = @transform_6, window_bounds = array<i64: 4, 32, 8>}, {pipeline_mode = #tpu.pipeline_mode<synchronous>, transform_indices = @transform_7, window_bounds = array<i64: 4, 8, 32>}, {pipeline_mode = #tpu.pipeline_mode<synchronous>, transform_indices = @transform_8, window_bounds = array<i64: 1, 32>}, {pipeline_mode = #tpu.pipeline_mode<synchronous>, transform_indices = @transform_9, window_bounds = array<i64: 1, 32>}, {pipeline_mode = #tpu.pipeline_mode<synchronous>, transform_indices = @transform_10, window_bounds = array<i64: 32, 64>}, {pipeline_mode = #tpu.pipeline_mode<synchronous>, transform_indices = @transform_11, window_bounds = array<i64: 1, 64>}, {pipeline_mode = #tpu.pipeline_mode<synchronous>, transform_indices = @transform_12, window_bounds = array<i64: 64, 32>}, {pipeline_mode = #tpu.pipeline_mode<synchronous>, transform_indices = @transform_13, window_bounds = array<i64: 1, 32>}, {pipeline_mode = #tpu.pipeline_mode<synchronous>, transform_indices = @transform_14, window_bounds = array<i64: 1, 32>}, {pipeline_mode = #tpu.pipeline_mode<synchronous>, transform_indices = @transform_15, window_bounds = array<i64: 1, 32>}, {transform_indices = @transform_16, window_bounds = array<i64: 1, 8, 32>}, {transform_indices = @transform_17, window_bounds = array<i64: 1, 4, 8, 16>}]} {
    %c0_i32 = arith.constant 0 : i32
    %0 = arith.cmpi eq, %arg1, %c0_i32 : i32
    %1 = arith.extui %0 : i1 to i32
    %c0_i32_0 = arith.constant 0 : i32
    %2 = arith.cmpi ne, %1, %c0_i32_0 : i32
    scf.if %2 {
      %c0_158 = arith.constant 0 : index
      %c0_159 = arith.constant 0 : index
      %c0_160 = arith.constant 0 : index
      %268 = vector.load %arg3[%c0_158, %c0_159, %c0_160] : memref<1x16x32xf32, #tpu.memory_space<vmem>>, vector<1x16x32xf32>
      %269 = vector.shape_cast %268 : vector<1x16x32xf32> to vector<16x32xf32>
      %270 = arith.truncf %269 : vector<16x32xf32> to vector<16x32xbf16>
      %c0_161 = arith.constant 0 : index
      %c0_162 = arith.constant 0 : index
      %c0_163 = arith.constant 0 : index
      %271 = vector.load %arg7[%c0_161, %c0_162, %c0_163] : memref<4x32x8xbf16, #tpu.memory_space<vmem>>, vector<1x32x8xbf16>
      %272 = vector.shape_cast %271 : vector<1x32x8xbf16> to vector<32x8xbf16>
      %cst_164 = arith.constant dense<0.000000e+00> : vector<16x8xf32>
      %273 = tpu.matmul %270, %272, %cst_164 {dimension_numbers = #tpu.dot_dimension_numbers<[1], [0], [0], [1], [0, 0, 1, 1], [], []>} : vector<16x32xbf16>, vector<32x8xbf16>, vector<16x8xf32> -> vector<16x8xf32>
      %274 = arith.truncf %273 : vector<16x8xf32> to vector<16x8xbf16>
      %c0_165 = arith.constant 0 : index
      %c0_166 = arith.constant 0 : index
      %c0_167 = arith.constant 0 : index
      %275 = vector.load %arg20[%c0_165, %c0_166, %c0_167] : memref<4x16x8xbf16, #tpu.memory_space<vmem>>, vector<1x16x8xbf16>
      %276 = vector.shape_cast %275 : vector<1x16x8xbf16> to vector<16x8xbf16>
      %277 = vector.shape_cast %274 : vector<16x8xbf16> to vector<1x16x8xbf16>
      tpu.vector_store %arg20[%c0_165, %c0_166, %c0_167], %277 {strides = array<i32>} : memref<4x16x8xbf16, #tpu.memory_space<vmem>>, vector<1x16x8xbf16>,
      %c0_168 = arith.constant 0 : index
      %c0_169 = arith.constant 0 : index
      %c0_170 = arith.constant 0 : index
      %278 = vector.load %arg8[%c0_168, %c0_169, %c0_170] : memref<4x32x8xbf16, #tpu.memory_space<vmem>>, vector<1x32x8xbf16>
      %279 = vector.shape_cast %278 : vector<1x32x8xbf16> to vector<32x8xbf16>
      %cst_171 = arith.constant dense<0.000000e+00> : vector<16x8xf32>
      %280 = tpu.matmul %270, %279, %cst_171 {dimension_numbers = #tpu.dot_dimension_numbers<[1], [0], [0], [1], [0, 0, 1, 1], [], []>} : vector<16x32xbf16>, vector<32x8xbf16>, vector<16x8xf32> -> vector<16x8xf32>
      %281 = arith.truncf %280 : vector<16x8xf32> to vector<16x8xbf16>
      %c0_172 = arith.constant 0 : index
      %c0_173 = arith.constant 0 : index
      %c0_174 = arith.constant 0 : index
      %282 = vector.load %arg21[%c0_172, %c0_173, %c0_174] : memref<4x16x8xbf16, #tpu.memory_space<vmem>>, vector<1x16x8xbf16>
      %283 = vector.shape_cast %282 : vector<1x16x8xbf16> to vector<16x8xbf16>
      %284 = vector.shape_cast %281 : vector<16x8xbf16> to vector<1x16x8xbf16>
      tpu.vector_store %arg21[%c0_172, %c0_173, %c0_174], %284 {strides = array<i32>} : memref<4x16x8xbf16, #tpu.memory_space<vmem>>, vector<1x16x8xbf16>,
      %c1_175 = arith.constant 1 : index
      %c0_176 = arith.constant 0 : index
      %c0_177 = arith.constant 0 : index
      %285 = vector.load %arg7[%c1_175, %c0_176, %c0_177] : memref<4x32x8xbf16, #tpu.memory_space<vmem>>, vector<1x32x8xbf16>
      %286 = vector.shape_cast %285 : vector<1x32x8xbf16> to vector<32x8xbf16>
      %cst_178 = arith.constant dense<0.000000e+00> : vector<16x8xf32>
      %287 = tpu.matmul %270, %286, %cst_178 {dimension_numbers = #tpu.dot_dimension_numbers<[1], [0], [0], [1], [0, 0, 1, 1], [], []>} : vector<16x32xbf16>, vector<32x8xbf16>, vector<16x8xf32> -> vector<16x8xf32>
      %288 = arith.truncf %287 : vector<16x8xf32> to vector<16x8xbf16>
      %c1_179 = arith.constant 1 : index
      %c0_180 = arith.constant 0 : index
      %c0_181 = arith.constant 0 : index
      %289 = vector.load %arg20[%c1_179, %c0_180, %c0_181] : memref<4x16x8xbf16, #tpu.memory_space<vmem>>, vector<1x16x8xbf16>
      %290 = vector.shape_cast %289 : vector<1x16x8xbf16> to vector<16x8xbf16>
      %291 = vector.shape_cast %288 : vector<16x8xbf16> to vector<1x16x8xbf16>
      tpu.vector_store %arg20[%c1_179, %c0_180, %c0_181], %291 {strides = array<i32>} : memref<4x16x8xbf16, #tpu.memory_space<vmem>>, vector<1x16x8xbf16>,
      %c1_182 = arith.constant 1 : index
      %c0_183 = arith.constant 0 : index
      %c0_184 = arith.constant 0 : index
      %292 = vector.load %arg8[%c1_182, %c0_183, %c0_184] : memref<4x32x8xbf16, #tpu.memory_space<vmem>>, vector<1x32x8xbf16>
      %293 = vector.shape_cast %292 : vector<1x32x8xbf16> to vector<32x8xbf16>
      %cst_185 = arith.constant dense<0.000000e+00> : vector<16x8xf32>
      %294 = tpu.matmul %270, %293, %cst_185 {dimension_numbers = #tpu.dot_dimension_numbers<[1], [0], [0], [1], [0, 0, 1, 1], [], []>} : vector<16x32xbf16>, vector<32x8xbf16>, vector<16x8xf32> -> vector<16x8xf32>
      %295 = arith.truncf %294 : vector<16x8xf32> to vector<16x8xbf16>
      %c1_186 = arith.constant 1 : index
      %c0_187 = arith.constant 0 : index
      %c0_188 = arith.constant 0 : index
      %296 = vector.load %arg21[%c1_186, %c0_187, %c0_188] : memref<4x16x8xbf16, #tpu.memory_space<vmem>>, vector<1x16x8xbf16>
      %297 = vector.shape_cast %296 : vector<1x16x8xbf16> to vector<16x8xbf16>
      %298 = vector.shape_cast %295 : vector<16x8xbf16> to vector<1x16x8xbf16>
      tpu.vector_store %arg21[%c1_186, %c0_187, %c0_188], %298 {strides = array<i32>} : memref<4x16x8xbf16, #tpu.memory_space<vmem>>, vector<1x16x8xbf16>,
      %c2_189 = arith.constant 2 : index
      %c0_190 = arith.constant 0 : index
      %c0_191 = arith.constant 0 : index
      %299 = vector.load %arg7[%c2_189, %c0_190, %c0_191] : memref<4x32x8xbf16, #tpu.memory_space<vmem>>, vector<1x32x8xbf16>
      %300 = vector.shape_cast %299 : vector<1x32x8xbf16> to vector<32x8xbf16>
      %cst_192 = arith.constant dense<0.000000e+00> : vector<16x8xf32>
      %301 = tpu.matmul %270, %300, %cst_192 {dimension_numbers = #tpu.dot_dimension_numbers<[1], [0], [0], [1], [0, 0, 1, 1], [], []>} : vector<16x32xbf16>, vector<32x8xbf16>, vector<16x8xf32> -> vector<16x8xf32>
      %302 = arith.truncf %301 : vector<16x8xf32> to vector<16x8xbf16>
      %c2_193 = arith.constant 2 : index
      %c0_194 = arith.constant 0 : index
      %c0_195 = arith.constant 0 : index
      %303 = vector.load %arg20[%c2_193, %c0_194, %c0_195] : memref<4x16x8xbf16, #tpu.memory_space<vmem>>, vector<1x16x8xbf16>
      %304 = vector.shape_cast %303 : vector<1x16x8xbf16> to vector<16x8xbf16>
      %305 = vector.shape_cast %302 : vector<16x8xbf16> to vector<1x16x8xbf16>
      tpu.vector_store %arg20[%c2_193, %c0_194, %c0_195], %305 {strides = array<i32>} : memref<4x16x8xbf16, #tpu.memory_space<vmem>>, vector<1x16x8xbf16>,
      %c2_196 = arith.constant 2 : index
      %c0_197 = arith.constant 0 : index
      %c0_198 = arith.constant 0 : index
      %306 = vector.load %arg8[%c2_196, %c0_197, %c0_198] : memref<4x32x8xbf16, #tpu.memory_space<vmem>>, vector<1x32x8xbf16>
      %307 = vector.shape_cast %306 : vector<1x32x8xbf16> to vector<32x8xbf16>
      %cst_199 = arith.constant dense<0.000000e+00> : vector<16x8xf32>
      %308 = tpu.matmul %270, %307, %cst_199 {dimension_numbers = #tpu.dot_dimension_numbers<[1], [0], [0], [1], [0, 0, 1, 1], [], []>} : vector<16x32xbf16>, vector<32x8xbf16>, vector<16x8xf32> -> vector<16x8xf32>
      %309 = arith.truncf %308 : vector<16x8xf32> to vector<16x8xbf16>
      %c2_200 = arith.constant 2 : index
      %c0_201 = arith.constant 0 : index
      %c0_202 = arith.constant 0 : index
      %310 = vector.load %arg21[%c2_200, %c0_201, %c0_202] : memref<4x16x8xbf16, #tpu.memory_space<vmem>>, vector<1x16x8xbf16>
      %311 = vector.shape_cast %310 : vector<1x16x8xbf16> to vector<16x8xbf16>
      %312 = vector.shape_cast %309 : vector<16x8xbf16> to vector<1x16x8xbf16>
      tpu.vector_store %arg21[%c2_200, %c0_201, %c0_202], %312 {strides = array<i32>} : memref<4x16x8xbf16, #tpu.memory_space<vmem>>, vector<1x16x8xbf16>,
      %c3_203 = arith.constant 3 : index
      %c0_204 = arith.constant 0 : index
      %c0_205 = arith.constant 0 : index
      %313 = vector.load %arg7[%c3_203, %c0_204, %c0_205] : memref<4x32x8xbf16, #tpu.memory_space<vmem>>, vector<1x32x8xbf16>
      %314 = vector.shape_cast %313 : vector<1x32x8xbf16> to vector<32x8xbf16>
      %cst_206 = arith.constant dense<0.000000e+00> : vector<16x8xf32>
      %315 = tpu.matmul %270, %314, %cst_206 {dimension_numbers = #tpu.dot_dimension_numbers<[1], [0], [0], [1], [0, 0, 1, 1], [], []>} : vector<16x32xbf16>, vector<32x8xbf16>, vector<16x8xf32> -> vector<16x8xf32>
      %316 = arith.truncf %315 : vector<16x8xf32> to vector<16x8xbf16>
      %c3_207 = arith.constant 3 : index
      %c0_208 = arith.constant 0 : index
      %c0_209 = arith.constant 0 : index
      %317 = vector.load %arg20[%c3_207, %c0_208, %c0_209] : memref<4x16x8xbf16, #tpu.memory_space<vmem>>, vector<1x16x8xbf16>
      %318 = vector.shape_cast %317 : vector<1x16x8xbf16> to vector<16x8xbf16>
      %319 = vector.shape_cast %316 : vector<16x8xbf16> to vector<1x16x8xbf16>
      tpu.vector_store %arg20[%c3_207, %c0_208, %c0_209], %319 {strides = array<i32>} : memref<4x16x8xbf16, #tpu.memory_space<vmem>>, vector<1x16x8xbf16>,
      %c3_210 = arith.constant 3 : index
      %c0_211 = arith.constant 0 : index
      %c0_212 = arith.constant 0 : index
      %320 = vector.load %arg8[%c3_210, %c0_211, %c0_212] : memref<4x32x8xbf16, #tpu.memory_space<vmem>>, vector<1x32x8xbf16>
      %321 = vector.shape_cast %320 : vector<1x32x8xbf16> to vector<32x8xbf16>
      %cst_213 = arith.constant dense<0.000000e+00> : vector<16x8xf32>
      %322 = tpu.matmul %270, %321, %cst_213 {dimension_numbers = #tpu.dot_dimension_numbers<[1], [0], [0], [1], [0, 0, 1, 1], [], []>} : vector<16x32xbf16>, vector<32x8xbf16>, vector<16x8xf32> -> vector<16x8xf32>
      %323 = arith.truncf %322 : vector<16x8xf32> to vector<16x8xbf16>
      %c3_214 = arith.constant 3 : index
      %c0_215 = arith.constant 0 : index
      %c0_216 = arith.constant 0 : index
      %324 = vector.load %arg21[%c3_214, %c0_215, %c0_216] : memref<4x16x8xbf16, #tpu.memory_space<vmem>>, vector<1x16x8xbf16>
      %325 = vector.shape_cast %324 : vector<1x16x8xbf16> to vector<16x8xbf16>
      %326 = vector.shape_cast %323 : vector<16x8xbf16> to vector<1x16x8xbf16>
      tpu.vector_store %arg21[%c3_214, %c0_215, %c0_216], %326 {strides = array<i32>} : memref<4x16x8xbf16, #tpu.memory_space<vmem>>, vector<1x16x8xbf16>,
    } else {
    }
    %c0 = arith.constant 0 : index
    %c0_1 = arith.constant 0 : index
    %c0_2 = arith.constant 0 : index
    %3 = vector.load %arg2[%c0, %c0_1, %c0_2] : memref<1x8x32xf32, #tpu.memory_space<vmem>>, vector<1x8x32xf32>
    %4 = vector.shape_cast %3 : vector<1x8x32xf32> to vector<8x32xf32>
    %5 = arith.truncf %4 : vector<8x32xf32> to vector<8x32xbf16>
    %c0_3 = arith.constant 0 : index
    %c0_4 = arith.constant 0 : index
    %c0_5 = arith.constant 0 : index
    %6 = vector.load %arg4[%c0_3, %c0_4, %c0_5] : memref<1x8x1xf32, #tpu.memory_space<vmem>>, vector<1x8x1xf32>
    %7 = vector.shape_cast %6 : vector<1x8x1xf32> to vector<8x1xf32>
    %c0_6 = arith.constant 0 : index
    %c0_7 = arith.constant 0 : index
    %c0_8 = arith.constant 0 : index
    %8 = vector.load %arg5[%c0_6, %c0_7, %c0_8] : memref<1x1x16xf32, #tpu.memory_space<vmem>>, vector<1x1x16xf32>
    %9 = vector.shape_cast %8 : vector<1x1x16xf32> to vector<1x16xf32>
    %cst = arith.constant 0.000000e+00 : f32
    %10 = vector.broadcast %cst : f32 to vector<8x1xf32>
    %11 = arith.cmpf ogt, %7, %10 : vector<8x1xf32>
    %cst_9 = arith.constant 0.000000e+00 : f32
    %12 = vector.broadcast %cst_9 : f32 to vector<1x16xf32>
    %13 = arith.cmpf ogt, %9, %12 : vector<1x16xf32>
    %14 = vector.broadcast %11 : vector<8x1xi1> to vector<8x16xi1>
    %15 = vector.broadcast %13 : vector<1x16xi1> to vector<8x16xi1>
    %16 = arith.ori %14, %15 : vector<8x16xi1>
    %cst_10 = arith.constant 0xFF800000 : f32
    %cst_11 = arith.constant 0.000000e+00 : f32
    %17 = vector.broadcast %cst_10 : f32 to vector<8x16xf32>
    %18 = vector.broadcast %cst_11 : f32 to vector<8x16xf32>
    %19 = arith.select %16, %17, %18 : vector<8x16xi1>, vector<8x16xf32>
    %cst_12 = arith.constant 0.000000e+00 : f32
    %20 = vector.broadcast %cst_12 : f32 to vector<8x32xf32>
    %c0_13 = arith.constant 0 : index
    %c0_14 = arith.constant 0 : index
    %c0_15 = arith.constant 0 : index
    %21 = vector.load %arg6[%c0_13, %c0_14, %c0_15] : memref<4x32x8xbf16, #tpu.memory_space<vmem>>, vector<1x32x8xbf16>
    %22 = vector.shape_cast %21 : vector<1x32x8xbf16> to vector<32x8xbf16>
    %cst_16 = arith.constant dense<0.000000e+00> : vector<8x8xf32>
    %23 = tpu.matmul %5, %22, %cst_16 {dimension_numbers = #tpu.dot_dimension_numbers<[1], [0], [0], [1], [0, 0, 1, 1], [], []>} : vector<8x32xbf16>, vector<32x8xbf16>, vector<8x8xf32> -> vector<8x8xf32>
    %24 = arith.truncf %23 : vector<8x8xf32> to vector<8x8xbf16>
    %c0_17 = arith.constant 0 : index
    %c0_18 = arith.constant 0 : index
    %c0_19 = arith.constant 0 : index
    %25 = vector.load %arg20[%c0_17, %c0_18, %c0_19] : memref<4x16x8xbf16, #tpu.memory_space<vmem>>, vector<1x16x8xbf16>
    %26 = vector.shape_cast %25 : vector<1x16x8xbf16> to vector<16x8xbf16>
    %cst_20 = arith.constant dense<0.000000e+00> : vector<8x16xf32>
    %27 = tpu.matmul %24, %26, %cst_20 {dimension_numbers = #tpu.dot_dimension_numbers<[1], [1], [0], [0], [0, 0, 1, 0], [], []>} : vector<8x8xbf16>, vector<16x8xbf16>, vector<8x16xf32> -> vector<8x16xf32>
    %cst_21 = arith.constant 0.353553385 : f32
    %28 = vector.broadcast %cst_21 : f32 to vector<8x16xf32>
    %29 = arith.mulf %27, %28 : vector<8x16xf32>
    %30 = arith.addf %29, %19 : vector<8x16xf32>
    %cst_22 = arith.constant dense<0xFF800000> : vector<8xf32>
    %31 = vector.multi_reduction <maximumf>, %30, %cst_22 [1] : vector<8x16xf32> to vector<8xf32>
    %32 = vector.shape_cast %31 : vector<8xf32> to vector<8x1xf32>
    %cst_23 = arith.constant 0xFF800000 : f32
    %33 = vector.broadcast %cst_23 : f32 to vector<8x1xf32>
    %34 = arith.cmpf oeq, %32, %33 : vector<8x1xf32>
    %cst_24 = arith.constant 0.000000e+00 : f32
    %35 = vector.broadcast %cst_24 : f32 to vector<8x1xf32>
    %36 = arith.select %34, %35, %32 : vector<8x1xi1>, vector<8x1xf32>
    %37 = vector.broadcast %36 : vector<8x1xf32> to vector<8x16xf32>
    %38 = arith.subf %30, %37 : vector<8x16xf32>
    %39 = math.exp %38 : vector<8x16xf32>
    %cst_25 = arith.constant dense<0.000000e+00> : vector<8xf32>
    %40 = vector.multi_reduction <add>, %39, %cst_25 [1] : vector<8x16xf32> to vector<8xf32>
    %41 = vector.shape_cast %40 : vector<8xf32> to vector<8x1xf32>
    %cst_26 = arith.constant 0.000000e+00 : f32
    %42 = vector.broadcast %cst_26 : f32 to vector<8x1xf32>
    %43 = arith.cmpf ogt, %41, %42 : vector<8x1xf32>
    %44 = tpu.reciprocal %41 {approx = true} : vector<8x1xf32> -> vector<8x1xf32>
    %cst_27 = arith.constant 0.000000e+00 : f32
    %45 = vector.broadcast %cst_27 : f32 to vector<8x1xf32>
    %46 = arith.select %43, %44, %45 : vector<8x1xi1>, vector<8x1xf32>
    %47 = vector.broadcast %46 : vector<8x1xf32> to vector<8x16xf32>
    %48 = arith.mulf %39, %47 : vector<8x16xf32>
    %cst_28 = arith.constant 0.000000e+00 : f32
    %cst_29 = arith.constant 0x7FC00000 : f32
    %49 = vector.broadcast %cst_28 : f32 to vector<8x1xf32>
    %50 = vector.broadcast %cst_29 : f32 to vector<8x1xf32>
    %51 = arith.select %43, %49, %50 : vector<8x1xi1>, vector<8x1xf32>
    %52 = vector.broadcast %51 : vector<8x1xf32> to vector<8x16xf32>
    %53 = arith.addf %48, %52 : vector<8x16xf32>
    %c0_30 = arith.constant 0 : index
    %c0_31 = arith.constant 0 : index
    %c0_32 = arith.constant 0 : index
    %c0_33 = arith.constant 0 : index
    %54 = vector.load %arg19[%c0_30, %c0_31, %c0_32, %c0_33] : memref<1x4x8x16xf32, #tpu.memory_space<vmem>>, vector<1x1x8x16xf32>
    %55 = vector.shape_cast %54 : vector<1x1x8x16xf32> to vector<8x16xf32>
    %56 = vector.shape_cast %53 : vector<8x16xf32> to vector<1x1x8x16xf32>
    tpu.vector_store %arg19[%c0_30, %c0_31, %c0_32, %c0_33], %56 {strides = array<i32>} : memref<1x4x8x16xf32, #tpu.memory_space<vmem>>, vector<1x1x8x16xf32>,
    %57 = arith.truncf %48 : vector<8x16xf32> to vector<8x16xbf16>
    %c0_34 = arith.constant 0 : index
    %c0_35 = arith.constant 0 : index
    %c0_36 = arith.constant 0 : index
    %58 = vector.load %arg21[%c0_34, %c0_35, %c0_36] : memref<4x16x8xbf16, #tpu.memory_space<vmem>>, vector<1x16x8xbf16>
    %59 = vector.shape_cast %58 : vector<1x16x8xbf16> to vector<16x8xbf16>
    %cst_37 = arith.constant dense<0.000000e+00> : vector<8x8xf32>
    %60 = tpu.matmul %57, %59, %cst_37 {dimension_numbers = #tpu.dot_dimension_numbers<[1], [0], [0], [1], [0, 0, 1, 1], [], []>} : vector<8x16xbf16>, vector<16x8xbf16>, vector<8x8xf32> -> vector<8x8xf32>
    %61 = arith.truncf %60 : vector<8x8xf32> to vector<8x8xbf16>
    %c0_38 = arith.constant 0 : index
    %c0_39 = arith.constant 0 : index
    %c0_40 = arith.constant 0 : index
    %62 = vector.load %arg9[%c0_38, %c0_39, %c0_40] : memref<4x8x32xbf16, #tpu.memory_space<vmem>>, vector<1x8x32xbf16>
    %63 = vector.shape_cast %62 : vector<1x8x32xbf16> to vector<8x32xbf16>
    %cst_41 = arith.constant dense<0.000000e+00> : vector<8x32xf32>
    %64 = tpu.matmul %61, %63, %cst_41 {dimension_numbers = #tpu.dot_dimension_numbers<[1], [0], [0], [1], [0, 0, 1, 1], [], []>} : vector<8x8xbf16>, vector<8x32xbf16>, vector<8x32xf32> -> vector<8x32xf32>
    %65 = arith.addf %20, %64 : vector<8x32xf32>
    %c1 = arith.constant 1 : index
    %c0_42 = arith.constant 0 : index
    %c0_43 = arith.constant 0 : index
    %66 = vector.load %arg6[%c1, %c0_42, %c0_43] : memref<4x32x8xbf16, #tpu.memory_space<vmem>>, vector<1x32x8xbf16>
    %67 = vector.shape_cast %66 : vector<1x32x8xbf16> to vector<32x8xbf16>
    %cst_44 = arith.constant dense<0.000000e+00> : vector<8x8xf32>
    %68 = tpu.matmul %5, %67, %cst_44 {dimension_numbers = #tpu.dot_dimension_numbers<[1], [0], [0], [1], [0, 0, 1, 1], [], []>} : vector<8x32xbf16>, vector<32x8xbf16>, vector<8x8xf32> -> vector<8x8xf32>
    %69 = arith.truncf %68 : vector<8x8xf32> to vector<8x8xbf16>
    %c1_45 = arith.constant 1 : index
    %c0_46 = arith.constant 0 : index
    %c0_47 = arith.constant 0 : index
    %70 = vector.load %arg20[%c1_45, %c0_46, %c0_47] : memref<4x16x8xbf16, #tpu.memory_space<vmem>>, vector<1x16x8xbf16>
    %71 = vector.shape_cast %70 : vector<1x16x8xbf16> to vector<16x8xbf16>
    %cst_48 = arith.constant dense<0.000000e+00> : vector<8x16xf32>
    %72 = tpu.matmul %69, %71, %cst_48 {dimension_numbers = #tpu.dot_dimension_numbers<[1], [1], [0], [0], [0, 0, 1, 0], [], []>} : vector<8x8xbf16>, vector<16x8xbf16>, vector<8x16xf32> -> vector<8x16xf32>
    %cst_49 = arith.constant 0.353553385 : f32
    %73 = vector.broadcast %cst_49 : f32 to vector<8x16xf32>
    %74 = arith.mulf %72, %73 : vector<8x16xf32>
    %75 = arith.addf %74, %19 : vector<8x16xf32>
    %cst_50 = arith.constant dense<0xFF800000> : vector<8xf32>
    %76 = vector.multi_reduction <maximumf>, %75, %cst_50 [1] : vector<8x16xf32> to vector<8xf32>
    %77 = vector.shape_cast %76 : vector<8xf32> to vector<8x1xf32>
    %cst_51 = arith.constant 0xFF800000 : f32
    %78 = vector.broadcast %cst_51 : f32 to vector<8x1xf32>
    %79 = arith.cmpf oeq, %77, %78 : vector<8x1xf32>
    %cst_52 = arith.constant 0.000000e+00 : f32
    %80 = vector.broadcast %cst_52 : f32 to vector<8x1xf32>
    %81 = arith.select %79, %80, %77 : vector<8x1xi1>, vector<8x1xf32>
    %82 = vector.broadcast %81 : vector<8x1xf32> to vector<8x16xf32>
    %83 = arith.subf %75, %82 : vector<8x16xf32>
    %84 = math.exp %83 : vector<8x16xf32>
    %cst_53 = arith.constant dense<0.000000e+00> : vector<8xf32>
    %85 = vector.multi_reduction <add>, %84, %cst_53 [1] : vector<8x16xf32> to vector<8xf32>
    %86 = vector.shape_cast %85 : vector<8xf32> to vector<8x1xf32>
    %cst_54 = arith.constant 0.000000e+00 : f32
    %87 = vector.broadcast %cst_54 : f32 to vector<8x1xf32>
    %88 = arith.cmpf ogt, %86, %87 : vector<8x1xf32>
    %89 = tpu.reciprocal %86 {approx = true} : vector<8x1xf32> -> vector<8x1xf32>
    %cst_55 = arith.constant 0.000000e+00 : f32
    %90 = vector.broadcast %cst_55 : f32 to vector<8x1xf32>
    %91 = arith.select %88, %89, %90 : vector<8x1xi1>, vector<8x1xf32>
    %92 = vector.broadcast %91 : vector<8x1xf32> to vector<8x16xf32>
    %93 = arith.mulf %84, %92 : vector<8x16xf32>
    %cst_56 = arith.constant 0.000000e+00 : f32
    %cst_57 = arith.constant 0x7FC00000 : f32
    %94 = vector.broadcast %cst_56 : f32 to vector<8x1xf32>
    %95 = vector.broadcast %cst_57 : f32 to vector<8x1xf32>
    %96 = arith.select %88, %94, %95 : vector<8x1xi1>, vector<8x1xf32>
    %97 = vector.broadcast %96 : vector<8x1xf32> to vector<8x16xf32>
    %98 = arith.addf %93, %97 : vector<8x16xf32>
    %c0_58 = arith.constant 0 : index
    %c1_59 = arith.constant 1 : index
    %c0_60 = arith.constant 0 : index
    %c0_61 = arith.constant 0 : index
    %99 = vector.load %arg19[%c0_58, %c1_59, %c0_60, %c0_61] : memref<1x4x8x16xf32, #tpu.memory_space<vmem>>, vector<1x1x8x16xf32>
    %100 = vector.shape_cast %99 : vector<1x1x8x16xf32> to vector<8x16xf32>
    %101 = vector.shape_cast %98 : vector<8x16xf32> to vector<1x1x8x16xf32>
    tpu.vector_store %arg19[%c0_58, %c1_59, %c0_60, %c0_61], %101 {strides = array<i32>} : memref<1x4x8x16xf32, #tpu.memory_space<vmem>>, vector<1x1x8x16xf32>,
    %102 = arith.truncf %93 : vector<8x16xf32> to vector<8x16xbf16>
    %c1_62 = arith.constant 1 : index
    %c0_63 = arith.constant 0 : index
    %c0_64 = arith.constant 0 : index
    %103 = vector.load %arg21[%c1_62, %c0_63, %c0_64] : memref<4x16x8xbf16, #tpu.memory_space<vmem>>, vector<1x16x8xbf16>
    %104 = vector.shape_cast %103 : vector<1x16x8xbf16> to vector<16x8xbf16>
    %cst_65 = arith.constant dense<0.000000e+00> : vector<8x8xf32>
    %105 = tpu.matmul %102, %104, %cst_65 {dimension_numbers = #tpu.dot_dimension_numbers<[1], [0], [0], [1], [0, 0, 1, 1], [], []>} : vector<8x16xbf16>, vector<16x8xbf16>, vector<8x8xf32> -> vector<8x8xf32>
    %106 = arith.truncf %105 : vector<8x8xf32> to vector<8x8xbf16>
    %c1_66 = arith.constant 1 : index
    %c0_67 = arith.constant 0 : index
    %c0_68 = arith.constant 0 : index
    %107 = vector.load %arg9[%c1_66, %c0_67, %c0_68] : memref<4x8x32xbf16, #tpu.memory_space<vmem>>, vector<1x8x32xbf16>
    %108 = vector.shape_cast %107 : vector<1x8x32xbf16> to vector<8x32xbf16>
    %cst_69 = arith.constant dense<0.000000e+00> : vector<8x32xf32>
    %109 = tpu.matmul %106, %108, %cst_69 {dimension_numbers = #tpu.dot_dimension_numbers<[1], [0], [0], [1], [0, 0, 1, 1], [], []>} : vector<8x8xbf16>, vector<8x32xbf16>, vector<8x32xf32> -> vector<8x32xf32>
    %110 = arith.addf %65, %109 : vector<8x32xf32>
    %c2 = arith.constant 2 : index
    %c0_70 = arith.constant 0 : index
    %c0_71 = arith.constant 0 : index
    %111 = vector.load %arg6[%c2, %c0_70, %c0_71] : memref<4x32x8xbf16, #tpu.memory_space<vmem>>, vector<1x32x8xbf16>
    %112 = vector.shape_cast %111 : vector<1x32x8xbf16> to vector<32x8xbf16>
    %cst_72 = arith.constant dense<0.000000e+00> : vector<8x8xf32>
    %113 = tpu.matmul %5, %112, %cst_72 {dimension_numbers = #tpu.dot_dimension_numbers<[1], [0], [0], [1], [0, 0, 1, 1], [], []>} : vector<8x32xbf16>, vector<32x8xbf16>, vector<8x8xf32> -> vector<8x8xf32>
    %114 = arith.truncf %113 : vector<8x8xf32> to vector<8x8xbf16>
    %c2_73 = arith.constant 2 : index
    %c0_74 = arith.constant 0 : index
    %c0_75 = arith.constant 0 : index
    %115 = vector.load %arg20[%c2_73, %c0_74, %c0_75] : memref<4x16x8xbf16, #tpu.memory_space<vmem>>, vector<1x16x8xbf16>
    %116 = vector.shape_cast %115 : vector<1x16x8xbf16> to vector<16x8xbf16>
    %cst_76 = arith.constant dense<0.000000e+00> : vector<8x16xf32>
    %117 = tpu.matmul %114, %116, %cst_76 {dimension_numbers = #tpu.dot_dimension_numbers<[1], [1], [0], [0], [0, 0, 1, 0], [], []>} : vector<8x8xbf16>, vector<16x8xbf16>, vector<8x16xf32> -> vector<8x16xf32>
    %cst_77 = arith.constant 0.353553385 : f32
    %118 = vector.broadcast %cst_77 : f32 to vector<8x16xf32>
    %119 = arith.mulf %117, %118 : vector<8x16xf32>
    %120 = arith.addf %119, %19 : vector<8x16xf32>
    %cst_78 = arith.constant dense<0xFF800000> : vector<8xf32>
    %121 = vector.multi_reduction <maximumf>, %120, %cst_78 [1] : vector<8x16xf32> to vector<8xf32>
    %122 = vector.shape_cast %121 : vector<8xf32> to vector<8x1xf32>
    %cst_79 = arith.constant 0xFF800000 : f32
    %123 = vector.broadcast %cst_79 : f32 to vector<8x1xf32>
    %124 = arith.cmpf oeq, %122, %123 : vector<8x1xf32>
    %cst_80 = arith.constant 0.000000e+00 : f32
    %125 = vector.broadcast %cst_80 : f32 to vector<8x1xf32>
    %126 = arith.select %124, %125, %122 : vector<8x1xi1>, vector<8x1xf32>
    %127 = vector.broadcast %126 : vector<8x1xf32> to vector<8x16xf32>
    %128 = arith.subf %120, %127 : vector<8x16xf32>
    %129 = math.exp %128 : vector<8x16xf32>
    %cst_81 = arith.constant dense<0.000000e+00> : vector<8xf32>
    %130 = vector.multi_reduction <add>, %129, %cst_81 [1] : vector<8x16xf32> to vector<8xf32>
    %131 = vector.shape_cast %130 : vector<8xf32> to vector<8x1xf32>
    %cst_82 = arith.constant 0.000000e+00 : f32
    %132 = vector.broadcast %cst_82 : f32 to vector<8x1xf32>
    %133 = arith.cmpf ogt, %131, %132 : vector<8x1xf32>
    %134 = tpu.reciprocal %131 {approx = true} : vector<8x1xf32> -> vector<8x1xf32>
    %cst_83 = arith.constant 0.000000e+00 : f32
    %135 = vector.broadcast %cst_83 : f32 to vector<8x1xf32>
    %136 = arith.select %133, %134, %135 : vector<8x1xi1>, vector<8x1xf32>
    %137 = vector.broadcast %136 : vector<8x1xf32> to vector<8x16xf32>
    %138 = arith.mulf %129, %137 : vector<8x16xf32>
    %cst_84 = arith.constant 0.000000e+00 : f32
    %cst_85 = arith.constant 0x7FC00000 : f32
    %139 = vector.broadcast %cst_84 : f32 to vector<8x1xf32>
    %140 = vector.broadcast %cst_85 : f32 to vector<8x1xf32>
    %141 = arith.select %133, %139, %140 : vector<8x1xi1>, vector<8x1xf32>
    %142 = vector.broadcast %141 : vector<8x1xf32> to vector<8x16xf32>
    %143 = arith.addf %138, %142 : vector<8x16xf32>
    %c0_86 = arith.constant 0 : index
    %c2_87 = arith.constant 2 : index
    %c0_88 = arith.constant 0 : index
    %c0_89 = arith.constant 0 : index
    %144 = vector.load %arg19[%c0_86, %c2_87, %c0_88, %c0_89] : memref<1x4x8x16xf32, #tpu.memory_space<vmem>>, vector<1x1x8x16xf32>
    %145 = vector.shape_cast %144 : vector<1x1x8x16xf32> to vector<8x16xf32>
    %146 = vector.shape_cast %143 : vector<8x16xf32> to vector<1x1x8x16xf32>
    tpu.vector_store %arg19[%c0_86, %c2_87, %c0_88, %c0_89], %146 {strides = array<i32>} : memref<1x4x8x16xf32, #tpu.memory_space<vmem>>, vector<1x1x8x16xf32>,
    %147 = arith.truncf %138 : vector<8x16xf32> to vector<8x16xbf16>
    %c2_90 = arith.constant 2 : index
    %c0_91 = arith.constant 0 : index
    %c0_92 = arith.constant 0 : index
    %148 = vector.load %arg21[%c2_90, %c0_91, %c0_92] : memref<4x16x8xbf16, #tpu.memory_space<vmem>>, vector<1x16x8xbf16>
    %149 = vector.shape_cast %148 : vector<1x16x8xbf16> to vector<16x8xbf16>
    %cst_93 = arith.constant dense<0.000000e+00> : vector<8x8xf32>
    %150 = tpu.matmul %147, %149, %cst_93 {dimension_numbers = #tpu.dot_dimension_numbers<[1], [0], [0], [1], [0, 0, 1, 1], [], []>} : vector<8x16xbf16>, vector<16x8xbf16>, vector<8x8xf32> -> vector<8x8xf32>
    %151 = arith.truncf %150 : vector<8x8xf32> to vector<8x8xbf16>
    %c2_94 = arith.constant 2 : index
    %c0_95 = arith.constant 0 : index
    %c0_96 = arith.constant 0 : index
    %152 = vector.load %arg9[%c2_94, %c0_95, %c0_96] : memref<4x8x32xbf16, #tpu.memory_space<vmem>>, vector<1x8x32xbf16>
    %153 = vector.shape_cast %152 : vector<1x8x32xbf16> to vector<8x32xbf16>
    %cst_97 = arith.constant dense<0.000000e+00> : vector<8x32xf32>
    %154 = tpu.matmul %151, %153, %cst_97 {dimension_numbers = #tpu.dot_dimension_numbers<[1], [0], [0], [1], [0, 0, 1, 1], [], []>} : vector<8x8xbf16>, vector<8x32xbf16>, vector<8x32xf32> -> vector<8x32xf32>
    %155 = arith.addf %110, %154 : vector<8x32xf32>
    %c3 = arith.constant 3 : index
    %c0_98 = arith.constant 0 : index
    %c0_99 = arith.constant 0 : index
    %156 = vector.load %arg6[%c3, %c0_98, %c0_99] : memref<4x32x8xbf16, #tpu.memory_space<vmem>>, vector<1x32x8xbf16>
    %157 = vector.shape_cast %156 : vector<1x32x8xbf16> to vector<32x8xbf16>
    %cst_100 = arith.constant dense<0.000000e+00> : vector<8x8xf32>
    %158 = tpu.matmul %5, %157, %cst_100 {dimension_numbers = #tpu.dot_dimension_numbers<[1], [0], [0], [1], [0, 0, 1, 1], [], []>} : vector<8x32xbf16>, vector<32x8xbf16>, vector<8x8xf32> -> vector<8x8xf32>
    %159 = arith.truncf %158 : vector<8x8xf32> to vector<8x8xbf16>
    %c3_101 = arith.constant 3 : index
    %c0_102 = arith.constant 0 : index
    %c0_103 = arith.constant 0 : index
    %160 = vector.load %arg20[%c3_101, %c0_102, %c0_103] : memref<4x16x8xbf16, #tpu.memory_space<vmem>>, vector<1x16x8xbf16>
    %161 = vector.shape_cast %160 : vector<1x16x8xbf16> to vector<16x8xbf16>
    %cst_104 = arith.constant dense<0.000000e+00> : vector<8x16xf32>
    %162 = tpu.matmul %159, %161, %cst_104 {dimension_numbers = #tpu.dot_dimension_numbers<[1], [1], [0], [0], [0, 0, 1, 0], [], []>} : vector<8x8xbf16>, vector<16x8xbf16>, vector<8x16xf32> -> vector<8x16xf32>
    %cst_105 = arith.constant 0.353553385 : f32
    %163 = vector.broadcast %cst_105 : f32 to vector<8x16xf32>
    %164 = arith.mulf %162, %163 : vector<8x16xf32>
    %165 = arith.addf %164, %19 : vector<8x16xf32>
    %cst_106 = arith.constant dense<0xFF800000> : vector<8xf32>
    %166 = vector.multi_reduction <maximumf>, %165, %cst_106 [1] : vector<8x16xf32> to vector<8xf32>
    %167 = vector.shape_cast %166 : vector<8xf32> to vector<8x1xf32>
    %cst_107 = arith.constant 0xFF800000 : f32
    %168 = vector.broadcast %cst_107 : f32 to vector<8x1xf32>
    %169 = arith.cmpf oeq, %167, %168 : vector<8x1xf32>
    %cst_108 = arith.constant 0.000000e+00 : f32
    %170 = vector.broadcast %cst_108 : f32 to vector<8x1xf32>
    %171 = arith.select %169, %170, %167 : vector<8x1xi1>, vector<8x1xf32>
    %172 = vector.broadcast %171 : vector<8x1xf32> to vector<8x16xf32>
    %173 = arith.subf %165, %172 : vector<8x16xf32>
    %174 = math.exp %173 : vector<8x16xf32>
    %cst_109 = arith.constant dense<0.000000e+00> : vector<8xf32>
    %175 = vector.multi_reduction <add>, %174, %cst_109 [1] : vector<8x16xf32> to vector<8xf32>
    %176 = vector.shape_cast %175 : vector<8xf32> to vector<8x1xf32>
    %cst_110 = arith.constant 0.000000e+00 : f32
    %177 = vector.broadcast %cst_110 : f32 to vector<8x1xf32>
    %178 = arith.cmpf ogt, %176, %177 : vector<8x1xf32>
    %179 = tpu.reciprocal %176 {approx = true} : vector<8x1xf32> -> vector<8x1xf32>
    %cst_111 = arith.constant 0.000000e+00 : f32
    %180 = vector.broadcast %cst_111 : f32 to vector<8x1xf32>
    %181 = arith.select %178, %179, %180 : vector<8x1xi1>, vector<8x1xf32>
    %182 = vector.broadcast %181 : vector<8x1xf32> to vector<8x16xf32>
    %183 = arith.mulf %174, %182 : vector<8x16xf32>
    %cst_112 = arith.constant 0.000000e+00 : f32
    %cst_113 = arith.constant 0x7FC00000 : f32
    %184 = vector.broadcast %cst_112 : f32 to vector<8x1xf32>
    %185 = vector.broadcast %cst_113 : f32 to vector<8x1xf32>
    %186 = arith.select %178, %184, %185 : vector<8x1xi1>, vector<8x1xf32>
    %187 = vector.broadcast %186 : vector<8x1xf32> to vector<8x16xf32>
    %188 = arith.addf %183, %187 : vector<8x16xf32>
    %c0_114 = arith.constant 0 : index
    %c3_115 = arith.constant 3 : index
    %c0_116 = arith.constant 0 : index
    %c0_117 = arith.constant 0 : index
    %189 = vector.load %arg19[%c0_114, %c3_115, %c0_116, %c0_117] : memref<1x4x8x16xf32, #tpu.memory_space<vmem>>, vector<1x1x8x16xf32>
    %190 = vector.shape_cast %189 : vector<1x1x8x16xf32> to vector<8x16xf32>
    %191 = vector.shape_cast %188 : vector<8x16xf32> to vector<1x1x8x16xf32>
    tpu.vector_store %arg19[%c0_114, %c3_115, %c0_116, %c0_117], %191 {strides = array<i32>} : memref<1x4x8x16xf32, #tpu.memory_space<vmem>>, vector<1x1x8x16xf32>,
    %192 = arith.truncf %183 : vector<8x16xf32> to vector<8x16xbf16>
    %c3_118 = arith.constant 3 : index
    %c0_119 = arith.constant 0 : index
    %c0_120 = arith.constant 0 : index
    %193 = vector.load %arg21[%c3_118, %c0_119, %c0_120] : memref<4x16x8xbf16, #tpu.memory_space<vmem>>, vector<1x16x8xbf16>
    %194 = vector.shape_cast %193 : vector<1x16x8xbf16> to vector<16x8xbf16>
    %cst_121 = arith.constant dense<0.000000e+00> : vector<8x8xf32>
    %195 = tpu.matmul %192, %194, %cst_121 {dimension_numbers = #tpu.dot_dimension_numbers<[1], [0], [0], [1], [0, 0, 1, 1], [], []>} : vector<8x16xbf16>, vector<16x8xbf16>, vector<8x8xf32> -> vector<8x8xf32>
    %196 = arith.truncf %195 : vector<8x8xf32> to vector<8x8xbf16>
    %c3_122 = arith.constant 3 : index
    %c0_123 = arith.constant 0 : index
    %c0_124 = arith.constant 0 : index
    %197 = vector.load %arg9[%c3_122, %c0_123, %c0_124] : memref<4x8x32xbf16, #tpu.memory_space<vmem>>, vector<1x8x32xbf16>
    %198 = vector.shape_cast %197 : vector<1x8x32xbf16> to vector<8x32xbf16>
    %cst_125 = arith.constant dense<0.000000e+00> : vector<8x32xf32>
    %199 = tpu.matmul %196, %198, %cst_125 {dimension_numbers = #tpu.dot_dimension_numbers<[1], [0], [0], [1], [0, 0, 1, 1], [], []>} : vector<8x8xbf16>, vector<8x32xbf16>, vector<8x32xf32> -> vector<8x32xf32>
    %200 = arith.addf %155, %199 : vector<8x32xf32>
    %201 = arith.addf %200, %4 : vector<8x32xf32>
    %cst_126 = arith.constant dense<0.000000e+00> : vector<8xf32>
    %202 = vector.multi_reduction <add>, %201, %cst_126 [1] : vector<8x32xf32> to vector<8xf32>
    %203 = vector.shape_cast %202 : vector<8xf32> to vector<8x1xf32>
    %cst_127 = arith.constant 3.200000e+01 : f32
    %204 = vector.broadcast %cst_127 : f32 to vector<8x1xf32>
    %205 = arith.divf %203, %204 : vector<8x1xf32>
    %206 = vector.broadcast %205 : vector<8x1xf32> to vector<8x32xf32>
    %207 = arith.subf %201, %206 : vector<8x32xf32>
    %208 = arith.mulf %207, %207 : vector<8x32xf32>
    %cst_128 = arith.constant dense<0.000000e+00> : vector<8xf32>
    %209 = vector.multi_reduction <add>, %208, %cst_128 [1] : vector<8x32xf32> to vector<8xf32>
    %210 = vector.shape_cast %209 : vector<8xf32> to vector<8x1xf32>
    %cst_129 = arith.constant 3.200000e+01 : f32
    %211 = vector.broadcast %cst_129 : f32 to vector<8x1xf32>
    %212 = arith.divf %210, %211 : vector<8x1xf32>
    %213 = vector.broadcast %205 : vector<8x1xf32> to vector<8x32xf32>
    %214 = arith.subf %201, %213 : vector<8x32xf32>
    %cst_130 = arith.constant 9.99999974E-6 : f32
    %215 = vector.broadcast %cst_130 : f32 to vector<8x1xf32>
    %216 = arith.addf %212, %215 : vector<8x1xf32>
    %217 = math.rsqrt %216 : vector<8x1xf32>
    %218 = vector.broadcast %217 : vector<8x1xf32> to vector<8x32xf32>
    %219 = arith.mulf %214, %218 : vector<8x32xf32>
    %c0_131 = arith.constant 0 : index
    %c0_132 = arith.constant 0 : index
    %220 = vector.load %arg10[%c0_131, %c0_132] : memref<1x32xf32, #tpu.memory_space<vmem>>, vector<1x32xf32>
    %221 = vector.broadcast %220 : vector<1x32xf32> to vector<8x32xf32>
    %222 = arith.mulf %219, %221 : vector<8x32xf32>
    %c0_133 = arith.constant 0 : index
    %c0_134 = arith.constant 0 : index
    %223 = vector.load %arg11[%c0_133, %c0_134] : memref<1x32xf32, #tpu.memory_space<vmem>>, vector<1x32xf32>
    %224 = vector.broadcast %223 : vector<1x32xf32> to vector<8x32xf32>
    %225 = arith.addf %222, %224 : vector<8x32xf32>
    %226 = arith.truncf %225 : vector<8x32xf32> to vector<8x32xbf16>
    %c0_135 = arith.constant 0 : index
    %c0_136 = arith.constant 0 : index
    %227 = vector.load %arg12[%c0_135, %c0_136] : memref<32x64xbf16, #tpu.memory_space<vmem>>, vector<32x64xbf16>
    %cst_137 = arith.constant dense<0.000000e+00> : vector<8x64xf32>
    %228 = tpu.matmul %226, %227, %cst_137 {dimension_numbers = #tpu.dot_dimension_numbers<[1], [0], [0], [1], [0, 0, 1, 1], [], []>} : vector<8x32xbf16>, vector<32x64xbf16>, vector<8x64xf32> -> vector<8x64xf32>
    %c0_138 = arith.constant 0 : index
    %c0_139 = arith.constant 0 : index
    %229 = vector.load %arg13[%c0_138, %c0_139] : memref<1x64xf32, #tpu.memory_space<vmem>>, vector<1x64xf32>
    %230 = vector.broadcast %229 : vector<1x64xf32> to vector<8x64xf32>
    %231 = arith.addf %228, %230 : vector<8x64xf32>
    %cst_140 = arith.constant 0.000000e+00 : f32
    %232 = vector.broadcast %cst_140 : f32 to vector<8x64xf32>
    %233 = arith.maximumf %231, %232 : vector<8x64xf32>
    %234 = arith.truncf %233 : vector<8x64xf32> to vector<8x64xbf16>
    %c0_141 = arith.constant 0 : index
    %c0_142 = arith.constant 0 : index
    %235 = vector.load %arg14[%c0_141, %c0_142] : memref<64x32xbf16, #tpu.memory_space<vmem>>, vector<64x32xbf16>
    %cst_143 = arith.constant dense<0.000000e+00> : vector<8x32xf32>
    %236 = tpu.matmul %234, %235, %cst_143 {dimension_numbers = #tpu.dot_dimension_numbers<[1], [0], [0], [1], [0, 0, 1, 1], [], []>} : vector<8x64xbf16>, vector<64x32xbf16>, vector<8x32xf32> -> vector<8x32xf32>
    %c0_144 = arith.constant 0 : index
    %c0_145 = arith.constant 0 : index
    %237 = vector.load %arg15[%c0_144, %c0_145] : memref<1x32xf32, #tpu.memory_space<vmem>>, vector<1x32xf32>
    %238 = vector.broadcast %237 : vector<1x32xf32> to vector<8x32xf32>
    %239 = arith.addf %236, %238 : vector<8x32xf32>
    %240 = arith.addf %239, %225 : vector<8x32xf32>
    %cst_146 = arith.constant dense<0.000000e+00> : vector<8xf32>
    %241 = vector.multi_reduction <add>, %240, %cst_146 [1] : vector<8x32xf32> to vector<8xf32>
    %242 = vector.shape_cast %241 : vector<8xf32> to vector<8x1xf32>
    %cst_147 = arith.constant 3.200000e+01 : f32
    %243 = vector.broadcast %cst_147 : f32 to vector<8x1xf32>
    %244 = arith.divf %242, %243 : vector<8x1xf32>
    %245 = vector.broadcast %244 : vector<8x1xf32> to vector<8x32xf32>
    %246 = arith.subf %240, %245 : vector<8x32xf32>
    %247 = arith.mulf %246, %246 : vector<8x32xf32>
    %cst_148 = arith.constant dense<0.000000e+00> : vector<8xf32>
    %248 = vector.multi_reduction <add>, %247, %cst_148 [1] : vector<8x32xf32> to vector<8xf32>
    %249 = vector.shape_cast %248 : vector<8xf32> to vector<8x1xf32>
    %cst_149 = arith.constant 3.200000e+01 : f32
    %250 = vector.broadcast %cst_149 : f32 to vector<8x1xf32>
    %251 = arith.divf %249, %250 : vector<8x1xf32>
    %252 = vector.broadcast %244 : vector<8x1xf32> to vector<8x32xf32>
    %253 = arith.subf %240, %252 : vector<8x32xf32>
    %cst_150 = arith.constant 9.99999974E-6 : f32
    %254 = vector.broadcast %cst_150 : f32 to vector<8x1xf32>
    %255 = arith.addf %251, %254 : vector<8x1xf32>
    %256 = math.rsqrt %255 : vector<8x1xf32>
    %257 = vector.broadcast %256 : vector<8x1xf32> to vector<8x32xf32>
    %258 = arith.mulf %253, %257 : vector<8x32xf32>
    %c0_151 = arith.constant 0 : index
    %c0_152 = arith.constant 0 : index
    %259 = vector.load %arg16[%c0_151, %c0_152] : memref<1x32xf32, #tpu.memory_space<vmem>>, vector<1x32xf32>
    %260 = vector.broadcast %259 : vector<1x32xf32> to vector<8x32xf32>
    %261 = arith.mulf %258, %260 : vector<8x32xf32>
    %c0_153 = arith.constant 0 : index
    %c0_154 = arith.constant 0 : index
    %262 = vector.load %arg17[%c0_153, %c0_154] : memref<1x32xf32, #tpu.memory_space<vmem>>, vector<1x32xf32>
    %263 = vector.broadcast %262 : vector<1x32xf32> to vector<8x32xf32>
    %264 = arith.addf %261, %263 : vector<8x32xf32>
    %c0_155 = arith.constant 0 : index
    %c0_156 = arith.constant 0 : index
    %c0_157 = arith.constant 0 : index
    %265 = vector.load %arg18[%c0_155, %c0_156, %c0_157] : memref<1x8x32xf32, #tpu.memory_space<vmem>>, vector<1x8x32xf32>
    %266 = vector.shape_cast %265 : vector<1x8x32xf32> to vector<8x32xf32>
    %267 = vector.shape_cast %264 : vector<8x32xf32> to vector<1x8x32xf32>
    tpu.vector_store %arg18[%c0_155, %c0_156, %c0_157], %267 {strides = array<i32>} : memref<1x8x32xf32, #tpu.memory_space<vmem>>, vector<1x8x32xf32>,
    return
  }
  func.func @transform_0(%arg0: i32, %arg1: i32) -> (i32, i32, i32) {
    %c0_i32 = arith.constant 0 : i32
    %c0_i32_0 = arith.constant 0 : i32
    return %arg0, %arg1, %c0_i32 : i32, i32, i32
  }
  func.func @transform_1(%arg0: i32, %arg1: i32) -> (i32, i32, i32) {
    %c0_i32 = arith.constant 0 : i32
    %c0_i32_0 = arith.constant 0 : i32
    %c0_i32_1 = arith.constant 0 : i32
    return %arg0, %c0_i32, %c0_i32_0 : i32, i32, i32
  }
  func.func @transform_2(%arg0: i32, %arg1: i32) -> (i32, i32, i32) {
    %c0_i32 = arith.constant 0 : i32
    %c0_i32_0 = arith.constant 0 : i32
    return %arg0, %arg1, %c0_i32 : i32, i32, i32
  }
  func.func @transform_3(%arg0: i32, %arg1: i32) -> (i32, i32, i32) {
    %c0_i32 = arith.constant 0 : i32
    %c0_i32_0 = arith.constant 0 : i32
    %c0_i32_1 = arith.constant 0 : i32
    return %arg0, %c0_i32, %c0_i32_0 : i32, i32, i32
  }
  func.func @transform_4(%arg0: i32, %arg1: i32) -> (i32, i32, i32) {
    %c0_i32 = arith.constant 0 : i32
    %c0_i32_0 = arith.constant 0 : i32
    %c0_i32_1 = arith.constant 0 : i32
    %c0_i32_2 = arith.constant 0 : i32
    return %c0_i32, %c0_i32_0, %c0_i32_1 : i32, i32, i32
  }
  func.func @transform_5(%arg0: i32, %arg1: i32) -> (i32, i32, i32) {
    %c0_i32 = arith.constant 0 : i32
    %c0_i32_0 = arith.constant 0 : i32
    %c0_i32_1 = arith.constant 0 : i32
    %c0_i32_2 = arith.constant 0 : i32
    return %c0_i32, %c0_i32_0, %c0_i32_1 : i32, i32, i32
  }
  func.func @transform_6(%arg0: i32, %arg1: i32) -> (i32, i32, i32) {
    %c0_i32 = arith.constant 0 : i32
    %c0_i32_0 = arith.constant 0 : i32
    %c0_i32_1 = arith.constant 0 : i32
    %c0_i32_2 = arith.constant 0 : i32
    return %c0_i32, %c0_i32_0, %c0_i32_1 : i32, i32, i32
  }
  func.func @transform_7(%arg0: i32, %arg1: i32) -> (i32, i32, i32) {
    %c0_i32 = arith.constant 0 : i32
    %c0_i32_0 = arith.constant 0 : i32
    %c0_i32_1 = arith.constant 0 : i32
    %c0_i32_2 = arith.constant 0 : i32
    return %c0_i32, %c0_i32_0, %c0_i32_1 : i32, i32, i32
  }
  func.func @transform_8(%arg0: i32, %arg1: i32) -> (i32, i32) {
    %c0_i32 = arith.constant 0 : i32
    %c0_i32_0 = arith.constant 0 : i32
    %c0_i32_1 = arith.constant 0 : i32
    return %c0_i32, %c0_i32_0 : i32, i32
  }
  func.func @transform_9(%arg0: i32, %arg1: i32) -> (i32, i32) {
    %c0_i32 = arith.constant 0 : i32
    %c0_i32_0 = arith.constant 0 : i32
    %c0_i32_1 = arith.constant 0 : i32
    return %c0_i32, %c0_i32_0 : i32, i32
  }
  func.func @transform_10(%arg0: i32, %arg1: i32) -> (i32, i32) {
    %c0_i32 = arith.constant 0 : i32
    %c0_i32_0 = arith.constant 0 : i32
    %c0_i32_1 = arith.constant 0 : i32
    return %c0_i32, %c0_i32_0 : i32, i32
  }
  func.func @transform_11(%arg0: i32, %arg1: i32) -> (i32, i32) {
    %c0_i32 = arith.constant 0 : i32
    %c0_i32_0 = arith.constant 0 : i32
    %c0_i32_1 = arith.constant 0 : i32
    return %c0_i32, %c0_i32_0 : i32, i32
  }
  func.func @transform_12(%arg0: i32, %arg1: i32) -> (i32, i32) {
    %c0_i32 = arith.constant 0 : i32
    %c0_i32_0 = arith.constant 0 : i32
    %c0_i32_1 = arith.constant 0 : i32
    return %c0_i32, %c0_i32_0 : i32, i32
  }
  func.func @transform_13(%arg0: i32, %arg1: i32) -> (i32, i32) {
    %c0_i32 = arith.constant 0 : i32
    %c0_i32_0 = arith.constant 0 : i32
    %c0_i32_1 = arith.constant 0 : i32
    return %c0_i32, %c0_i32_0 : i32, i32
  }
  func.func @transform_14(%arg0: i32, %arg1: i32) -> (i32, i32) {
    %c0_i32 = arith.constant 0 : i32
    %c0_i32_0 = arith.constant 0 : i32
    %c0_i32_1 = arith.constant 0 : i32
    return %c0_i32, %c0_i32_0 : i32, i32
  }
  func.func @transform_15(%arg0: i32, %arg1: i32) -> (i32, i32) {
    %c0_i32 = arith.constant 0 : i32
    %c0_i32_0 = arith.constant 0 : i32
    %c0_i32_1 = arith.constant 0 : i32
    return %c0_i32, %c0_i32_0 : i32, i32
  }
  func.func @transform_16(%arg0: i32, %arg1: i32) -> (i32, i32, i32) {
    %c0_i32 = arith.constant 0 : i32
    %c0_i32_0 = arith.constant 0 : i32
    return %arg0, %arg1, %c0_i32 : i32, i32, i32
  }
  func.func @transform_17(%arg0: i32, %arg1: i32) -> (i32, i32, i32, i32) {
    %c0_i32 = arith.constant 0 : i32
    %c0_i32_0 = arith.constant 0 : i32
    %c0_i32_1 = arith.constant 0 : i32
    return %arg0, %c0_i32, %arg1, %c0_i32_0 : i32, i32, i32, i32
  }
}

</mosaic_0001>

<bundles_post_ra>
// kernel: tpu_custom_call.1
= control target key start
LH: loop header
LB: loop body
LE: loop exit
PB: predicated region body
PF: predicated region fallthrough
CT: control target
= control target key end

     0   :  { %s3718_s0 = inlined_call_operand.vmem [shape: f32[2,16,32], index: 0, kind: input, shape index: {}]   ;;  %s3719_s1 = inlined_call_operand.vmem [shape: f32[2,16,32], index: 1, kind: input, shape index: {}]   ;;  %s3720_s2 = inlined_call_operand.vmem [shape: f32[2,16,1], index: 2, kind: input, shape index: {}]   ;;  %s3721_s3 = inlined_call_operand.vmem [shape: f32[2,1,16], index: 3, kind: input, shape index: {}]   ;;  %s3722_s4 = inlined_call_operand.vmem [shape: bf16[4,32,8], index: 4, kind: input, shape index: {}]   ;;  %s3723_s5 = inlined_call_operand.vmem [shape: bf16[4,32,8], index: 5, kind: input, shape index: {}]   ;;  %s3724_s6 = inlined_call_operand.vmem [shape: bf16[4,32,8], index: 6, kind: input, shape index: {}]   ;;  %s3725_s7 = inlined_call_operand.vmem [shape: bf16[4,8,32], index: 7, kind: input, shape index: {}]   ;;  %s3726_s8 = inlined_call_operand.vmem [shape: f32[1,32], index: 8, kind: input, shape index: {}]   ;;  %s3727_s9 = inlined_call_operand.vmem [shape: f32[1,32], index: 9, kind: input, shape index: {}]   ;;  %s3728_s10 = inlined_call_operand.vmem [shape: bf16[32,64], index: 10, kind: input, shape index: {}]   ;;  %s3729_s11 = inlined_call_operand.vmem [shape: f32[1,64], index: 11, kind: input, shape index: {}]   ;;  %s3730_s12 = inlined_call_operand.vmem [shape: bf16[64,32], index: 12, kind: input, shape index: {}]   ;;  %s3731_s13 = inlined_call_operand.vmem [shape: f32[1,32], index: 13, kind: input, shape index: {}]   ;;  %s3732_s14 = inlined_call_operand.vmem [shape: f32[1,32], index: 14, kind: input, shape index: {}]   ;;  %s3733_s15 = inlined_call_operand.vmem [shape: f32[1,32], index: 15, kind: input, shape index: {}]   ;;  %s3734_s16 = inlined_call_operand.hbm [shape: f32[2,16,32], index: 16, kind: output, shape index: {0}]   ;;  %s3735_s17 = inlined_call_operand.hbm [shape: f32[2,4,16,16], index: 17, kind: output, shape index: {1}]  }
   0x1   :  { %3755 = sst [smem:[#allocation23_spill]] %s3718_s0 }
   0x2   :  { %3756 = sst [smem:[#allocation24_spill]] %s3719_s1 }
   0x3   :  { %3757 = sst [smem:[#allocation25_spill]] %s3726_s8 }
   0x4   :  { %3758 = sst [smem:[#allocation26_spill]] %s3727_s9 }
   0x5   :  { %3759 = sst [smem:[#allocation27_spill]] %s3729_s11 }
   0x6   :  { %3760 = sst [smem:[#allocation28_spill]] %s3730_s12 }
   0x7   :  { %3761 = sst [smem:[#allocation29_spill]] %s3731_s13 }
   0x8   :  { %3762 = sst [smem:[#allocation30_spill]] %s3732_s14 }
   0x9   :  { %3763 = sst [smem:[#allocation31_spill]] %s3733_s15 }
   0xa   :  { %3764 = sst [smem:[#allocation32_spill]] %s3734_s16 }
   0xb   :  { %3765 = sst [smem:[#allocation33_spill]] %s3735_s17 }
   0xc   :  { %23 = vsyncpa [#allocation5], 0 }
   0xd   :  { %25 = vsyncpa [#allocation5 + $0x1], 0 }
   0xe   :  { %26 = vsyncpa [#allocation7], 0 }
   0xf   :  { %28 = vsyncpa [#allocation7 + $0x1], 0  ;;  %s3209_s24 = smov 0   ;;  %s3211_s25 = smov 0  }
  0x10   :  { %s3213_s26 = smov 0   ;;  %s3215_s27 = smov 0  }
  0x11   :  { %s3217_s28 = smov 0   ;;  %s3219_s29 = smov 0  }
  0x12   :  { %s3221_s0 = smov 0   ;;  %s3223_s30 = smov 0  }
  0x13 LB: > { %3766 = sst [smem:[#allocation10_spill]] %s3078_s24  ;;  %s2461_s18 = sadd.s32 4294967295, %s3106_s30   ;;  %s3106_s30 = sphi %s3223_s30, %s34_s30   ;;  %s3102_s0 = sphi %s3221_s0, %s3804_s0   ;;  %s3098_s29 = sphi %s3219_s29, %s3803_s29   ;;  %s3094_s28 = sphi %s3217_s28, %s3802_s28   ;;  %s3090_s27 = sphi %s3215_s27, %s3801_s27   ;;  %s3086_s26 = sphi %s3213_s26, %s3800_s26   ;;  %s3082_s25 = sphi %s3211_s25, %s3799_s25   ;;  %s3078_s24 = sphi %s3209_s24, %s3798_s24  }
  0x14   : > { %3767 = sst [smem:[#allocation11_spill]] %s3082_s25  ;;  %s2462_s19 = sadd.s32 4294967294, %s3106_s30  }
  0x15   : > { %3768 = sst [smem:[#allocation12_spill]] %s3086_s26  ;;  %s43_s1 = sadd.s32 1, %s3098_s29 }
  0x16   : > { %3769 = sst [smem:[#allocation13_spill]] %s3094_s28  ;;  %p44_p0 = scmp.ge.s32.totalorder %s43_s1, 2 }
  0x17   : > { %3770 = sst [smem:[#allocation14_spill]] %s3098_s29  ;;  %s46_s20 = sadd.s32 1, %s3102_s0 }
  0x18   : > { %3771 = sst [smem:[#allocation15_spill]] %s3102_s0  ;;  %p425_p1 = scmp.ne.s32.totalorder %s3086_s26, %s3082_s25 }
  0x19   : > { %3772 = sst [smem:[#allocation16_spill]] %s3106_s30  ;;  %p426_p2 = scmp.eq.s32.totalorder %s2461_s18, 3 }
  0x1a   : > { %s3806_s1 = smov (%p44_p0, %s43_s1), 0  ;;  %s3808_s20 = smov (!%p44_p0, %s46_s20), %s3102_s0 }
  0x1b   : > { %3773 = sst [smem:[#allocation17_spill]] %s3806_s1  ;;  %s411_s21 = ssub.s32 %s3098_s29, %s3806_s1 }
  0x1c   : > { %p3260_p3 = por %p426_p2, %p425_p1  ;;  %p48_p4 = scmp.ge.s32.totalorder %s3808_s20, 2 }
  0x1d   : > { %p431_p5 = scmp.ne.s32.totalorder %s3082_s25, %s3078_s24  ;;  %p432_p6 = scmp.eq.s32.totalorder %s2462_s19, 3 }
  0x1e   : > { %s3774_s22 = scalar_select %p3260_p3, 1, 0 }
  0x1f   : > { %p2465_p7 = scmp.ge.s32.totalorder %s3106_s30, 1  ;;  %s3810_s20 = smov (%p48_p4, %s3808_s20), 0 }
  0x20   : > { %3775 = sst [smem:[#allocation18_spill]] %s3774_s22  ;;  %p3269_p8 = por %p432_p6, %p431_p5 }
  0x21   : > { %3776 = sst [smem:[#allocation19_spill]] %s3810_s20  ;;  %p550_p9 = scmp.lt.s32.totalorder %s3106_s30, 5 }
  0x22   : > { %s3777_s23 = scalar_select %p3269_p8, 1, 0 }
  0x23   : > { %s410_s18 = ssub.s32 %s3102_s0, %s3810_s20  ;;  %s415_s16 = sadd.s32 1, %s3086_s26 }
  0x24   : > { %3778 = sst [smem:[#allocation20_spill]] %s3777_s23  ;;  %s412_s15 = sor.u32 %s411_s21, %s410_s18 }
  0x25   : > { %p551_p10 = pnand %p2465_p7, %p550_p9  ;;  %p413_p11 = scmp.eq.s32.totalorder %s412_s15, 0 }
  0x27   : > { %s3278_s1 = scalar_select %p413_p11, %s3086_s26, %s415_s16  }
  0x28   : > { %554 = sbr.rel (%p551_p10) target bundleno = 4844 (0x12ec), region = 84 }
  0x29   : > { %3779 = sst [smem:[#allocation21_spill]] %s3278_s1 }
  0x2f   : > { %s3281_s19 = sand.u32 1, %s3082_s25   ;;  %p626_p12 = scmp.lt.s32.totalorder %s3094_s28, 1 }
  0x30   : > { %3780 = sst [smem:[#allocation22_spill]] %s3281_s19  ;;  %s2466_s29 = sshll.u32 %s3281_s19, 3 }
  0x31   : > { %s2467_s23 = sshll.u32 %s3281_s19, 5  ;;  %p628_p13 = scmp.lt.s32.totalorder %s3090_s27, 1 }
  0x32   : > { %s3287_s20 = scalar_select %p626_p12, %s3094_s28, 1 }
  0x33   : > { %s629_s21 = scalar_select %p628_p13, %s3090_s27, 1 }
  0x34   : > { %s2468_s15 = sshll.u32 %s3287_s20, 1  ;;  %s2587_s16 = sshll.u32 %s3287_s20, 4 }
  0x35   : > { %s3781_s1 = sld [smem:[#allocation24_spill]]  ;;  %s649_s30 = scalar_lea.vmem %s3721_s3, %s3287_s20 }
  0x36   : > { %s631_s14 = sadd.s32 %s2468_s15, %s629_s21  ;;  %s3782_s28 = sld [smem:[#allocation23_spill]] }
  0x37   : > { %s2469_s17 = sshll.u32 %s631_s14, 3  ;;  %s3310_s12 = scalar_lea.vmem [#allocation4], %s2466_s29 }
  0x38   : > { %s3308_s8 = scalar_lea.vmem %s3720_s2, %s2469_s17  ;;  %s3312_s0 = scalar_lea.vmem [#allocation6], %s2467_s23 }
  0x39   : > { %p2474_p0 = scmp.ne.s32.totalorder %s3090_s27, 0 }
  0x3a   : > { %v2929_v0 = vld [vmem:[%s3723_s5] sm:$0xff] (!%p2474_p0)   ;;  %v3108_v1 = vmov (!%p2474_p0), 0.0   ;;  %v2931_v3 = vld [vmem:[%s3723_s5 + $0x8] sm:$0xff] (!%p2474_p0)   ;;  %vm3109_vm0 = vmmov (!%p2474_p0), 0   ;;  %vm674_vm1 = vcmask (!%p2474_p0), 261120   ;;  %v2933_v8 = vld [vmem:[%s3723_s5 + $0x10] sm:$0xff] (!%p2474_p0)  }
  0x3b   : > { %s638_s26 = scalar_lea.vmem %s3781_s1, %s2587_s16  ;;  %654 = sbr.rel (%p2474_p0) target bundleno = 309 (0x135), region = 88  ;;  %2656 = vmatprep.subr.bf16.mxu0 (!%p2474_p0), %v3108_v1  ;;  %2664 = vmatprep.subr.bf16.mxu1 (!%p2474_p0), %v3108_v1  ;;  %v2930_v2 = vld [vmem:[%s3724_s6] sm:$0xff] (!%p2474_p0)   ;;  %v2932_v4 = vld [vmem:[%s3724_s6 + $0x8] sm:$0xff] (!%p2474_p0)   ;;  %v2934_v9 = vld [vmem:[%s3724_s6 + $0x10] sm:$0xff] (!%p2474_p0)   ;;  %vm720_vm2 = vcmask (!%p2474_p0), 64512  }
  0x3c   : > { %s3303_s13 = scalar_lea.vmem %s3782_s28, %s2469_s17  ;;  %2657 = vmatpush3.bf16.msra.mxu0 (!%p2474_p0), %v2929_v0  ;;  %2660 = vmatprep.mubr.msk.bf16.mxu0 (!%p2474_p0), %vm3109_vm0, %v3108_v1  ;;  %v655_v5 = vld [vmem:[%s638_s26] sm:$0xff] (!%p2474_p0)  ;;  %v656_v6 = vld [vmem:[%s638_s26 + $0x8] sm:$0xff] (!%p2474_p0)  ;;  %v2935_v10 = vld [vmem:[%s3723_s5 + $0x18] sm:$0xff] (!%p2474_p0)  }
  0x3d   : > { %2665 = vmatpush3.bf16.msra.mxu1 (!%p2474_p0), %v2930_v2  ;;  %2658 = vmatprep.subr.bf16.mxu0 (!%p2474_p0), %v3108_v1  ;;  %v657_v7 = vpack.c.bf16 (!%p2474_p0), %v656_v6, %v655_v5  ;;  %v2936_v11 = vld [vmem:[%s3724_s6 + $0x18] sm:$0xff] (!%p2474_p0)   ;;  %v2937_v12 = vld [vmem:[%s3723_s5 + $0x20] sm:$0xff] (!%p2474_p0)   ;;  %v2939_v14 = vld [vmem:[%s3723_s5 + $0x28] sm:$0xff] (!%p2474_p0)  }
  0x3e   : > { %2666 = vmatprep.subr.bf16.mxu1 (!%p2474_p0), %v3108_v1  ;;  %2668 = vmatprep.mubr.msk.bf16.mxu1 (!%p2474_p0), %vm3109_vm0, %v3108_v1  ;;  %v2938_v13 = vld [vmem:[%s3724_s6 + $0x20] sm:$0xff] (!%p2474_p0)   ;;  %v2940_v15 = vld [vmem:[%s3724_s6 + $0x28] sm:$0xff] (!%p2474_p0)   ;;  %v2941_v16 = vld [vmem:[%s3723_s5 + $0x30] sm:$0xff] (!%p2474_p0)  }
  0x3f   : > { %v2942_v17 = vld [vmem:[%s3724_s6 + $0x30] sm:$0xff] (!%p2474_p0)   ;;  %v2943_v18 = vld [vmem:[%s3723_s5 + $0x38] sm:$0xff] (!%p2474_p0)  }
  0x40   : > { %2659 = vmatpush3.bf16.msra.mxu0 (!%p2474_p0), %v2931_v3  ;;  %v2944_v19 = vld [vmem:[%s3724_s6 + $0x38] sm:$0xff] (!%p2474_p0)  }
  0x41   : > { %2667 = vmatpush3.bf16.msra.mxu1 (!%p2474_p0), %v2932_v4  ;;  %2672 = vmatprep.subr.bf16.mxu0 (!%p2474_p0), %v3108_v1 }
  0x42   : > { %2680 = vmatprep.subr.bf16.mxu1 %v3108_v1 }
  0x43   : > { %2661 = vmatmul.mubr.msk.bf16.vlgmr.msra.gmra.mrb[0].mxu0 %vm674_vm1, %v657_v7 }
  0x44   : > { %2669 = vmatmul.mubr.msk.bf16.vlgmr.msra.gmra.mrb[0].mxu1 %vm674_vm1, %v657_v7  ;;  %2673 = vmatpush3.bf16.msra.mxu0 %v2933_v8 }
  0x45   : > { %2681 = vmatpush3.bf16.msra.mxu1 %v2934_v9  ;;  %2674 = vmatprep.subr.bf16.mxu0 %v3108_v1 }
  0x46   : > { %2682 = vmatprep.subr.bf16.mxu1 %v3108_v1  ;;  %2676 = vmatprep.mubr.msk.bf16.mxu0 %vm3109_vm0, %v3108_v1 }
  0x47   : > { %2684 = vmatprep.mubr.msk.bf16.mxu1 %vm3109_vm0, %v3108_v1 }
  0x48   : > { %2675 = vmatpush3.bf16.msra.mxu0 %v2935_v10 }
  0x49   : > { %2683 = vmatpush3.bf16.msra.mxu1 %v2936_v11  ;;  %2688 = vmatprep.subr.bf16.mxu0 %v3108_v1 }
  0x4a   : > { %2696 = vmatprep.subr.bf16.mxu1 %v3108_v1 }
  0x4b   : > { %2677 = vmatmul.mubr.msk.bf16.vlgmr.msra.gmra.mrb[4].mxu0 %vm674_vm1, %v657_v7 }
  0x4c   : > { %2685 = vmatmul.mubr.msk.bf16.vlgmr.msra.gmra.mrb[4].mxu1 %vm674_vm1, %v657_v7  ;;  %2689 = vmatpush3.bf16.msra.mxu0 %v2937_v12 }
  0x4d   : > { %2697 = vmatpush3.bf16.msra.mxu1 %v2938_v13  ;;  %2690 = vmatprep.subr.bf16.mxu0 %v3108_v1 }
  0x4e   : > { %2698 = vmatprep.subr.bf16.mxu1 %v3108_v1  ;;  %2692 = vmatprep.mubr.msk.bf16.mxu0 %vm3109_vm0, %v3108_v1 }
  0x4f   : > { %2700 = vmatprep.mubr.msk.bf16.mxu1 %vm3109_vm0, %v3108_v1 }
  0x50   : > { %2691 = vmatpush3.bf16.msra.mxu0 %v2939_v14 }
  0x51   : > { %2699 = vmatpush3.bf16.msra.mxu1 %v2940_v15  ;;  %2704 = vmatprep.subr.bf16.mxu0 %v3108_v1 }
  0x52   : > { %2712 = vmatprep.subr.bf16.mxu1 %v3108_v1 }
  0x53   : > { %2693 = vmatmul.mubr.msk.bf16.vlgmr.msra.gmra.mrb[8].mxu0 %vm674_vm1, %v657_v7 }
  0x54   : > { %2701 = vmatmul.mubr.msk.bf16.vlgmr.msra.gmra.mrb[8].mxu1 %vm674_vm1, %v657_v7  ;;  %2705 = vmatpush3.bf16.msra.mxu0 %v2941_v16 }
  0x55   : > { %2713 = vmatpush3.bf16.msra.mxu1 %v2942_v17  ;;  %2706 = vmatprep.subr.bf16.mxu0 %v3108_v1 }
  0x56   : > { %2714 = vmatprep.subr.bf16.mxu1 %v3108_v1  ;;  %2708 = vmatprep.mubr.msk.bf16.mxu0 %vm3109_vm0, %v3108_v1 }
  0x57   : > { %2716 = vmatprep.mubr.msk.bf16.mxu1 %vm3109_vm0, %v3108_v1 }
  0x58   : > { %2707 = vmatpush3.bf16.msra.mxu0 %v2943_v18 }
  0x59   : > { %2715 = vmatpush3.bf16.msra.mxu1 %v2944_v19 }
  0x5b   : > { %2709 = vmatmul.mubr.msk.bf16.vlgmr.msra.gmra.mrb[12].mxu0 %vm674_vm1, %v657_v7 }
  0x5c   : > { %2717 = vmatmul.mubr.msk.bf16.vlgmr.msra.gmra.mrb[12].mxu1 %vm674_vm1, %v657_v7 }
 0x116   : > { %v712_v20 = vpop.f32.mrb[0].mxu0 }
 0x117   : > { %v772_v21 = vpop.f32.mrb[0].mxu1  ;;  %v2662_v22 = vpop.f32.mrb[1].mxu0 }
 0x118   : > { %v2670_v23 = vpop.f32.mrb[1].mxu1  ;;  %v715_v24 = vpop.f32.mrb[2].mxu0 }
 0x119   : > { %v719_v25 = vpack.c.bf16 %v715_v24, %v712_v20  ;;  %v775_v26 = vpop.f32.mrb[2].mxu1  ;;  %v2663_v27 = vpop.f32.mrb[3].mxu0 }
 0x11a   : > { %v779_v28 = vpack.c.bf16 %v775_v26, %v772_v21  ;;  %v2671_v29 = vpop.f32.mrb[3].mxu1 }
 0x11b   : > { %721 = vst.msk [vmem:[#allocation2] sm:$0xff] %vm720_vm2, %v719_v25 }
 0x11c   : > { %780 = vst.msk [vmem:[#allocation3] sm:$0xff] %vm720_vm2, %v779_v28 }
 0x11e   : > { %v832_v30 = vpop.f32.mrb[4].mxu0 }
 0x11f   : > { %v893_v31 = vpop.f32.mrb[4].mxu1  ;;  %v2678_v32 = vpop.f32.mrb[5].mxu0 }
 0x120   : > { %v2686_v33 = vpop.f32.mrb[5].mxu1  ;;  %v835_v34 = vpop.f32.mrb[6].mxu0 }
 0x121   : > { %v839_v35 = vpack.c.bf16 %v835_v34, %v832_v30  ;;  %v896_v36 = vpop.f32.mrb[6].mxu1  ;;  %v2679_v37 = vpop.f32.mrb[7].mxu0 }
 0x122   : > { %v900_v38 = vpack.c.bf16 %v896_v36, %v893_v31  ;;  %v2687_v39 = vpop.f32.mrb[7].mxu1 }
 0x123   : > { %841 = vst.msk [vmem:[#allocation2 + $0x8] sm:$0xff] %vm720_vm2, %v839_v35 }
 0x124   : > { %902 = vst.msk [vmem:[#allocation3 + $0x8] sm:$0xff] %vm720_vm2, %v900_v38 }
 0x126   : > { %v954_v40 = vpop.f32.mrb[8].mxu0 }
 0x127   : > { %v1015_v41 = vpop.f32.mrb[8].mxu1  ;;  %v2694_v42 = vpop.f32.mrb[9].mxu0 }
 0x128   : > { %v2702_v43 = vpop.f32.mrb[9].mxu1  ;;  %v957_v44 = vpop.f32.mrb[10].mxu0 }
 0x129   : > { %v961_v45 = vpack.c.bf16 %v957_v44, %v954_v40  ;;  %v1018_v46 = vpop.f32.mrb[10].mxu1  ;;  %v2695_v47 = vpop.f32.mrb[11].mxu0 }
 0x12a   : > { %v1022_v48 = vpack.c.bf16 %v1018_v46, %v1015_v41  ;;  %v2703_v49 = vpop.f32.mrb[11].mxu1 }
 0x12b   : > { %963 = vst.msk [vmem:[#allocation2 + $0x10] sm:$0xff] %vm720_vm2, %v961_v45 }
 0x12c   : > { %1024 = vst.msk [vmem:[#allocation3 + $0x10] sm:$0xff] %vm720_vm2, %v1022_v48 }
 0x12e   : > { %v1076_v50 = vpop.f32.mrb[12].mxu0 }
 0x12f   : > { %v1137_v51 = vpop.f32.mrb[12].mxu1  ;;  %v2710_v52 = vpop.f32.mrb[13].mxu0 }
 0x130   : > { %v2718_v53 = vpop.f32.mrb[13].mxu1  ;;  %v1079_v54 = vpop.f32.mrb[14].mxu0 }
 0x131   : > { %v1083_v55 = vpack.c.bf16 %v1079_v54, %v1076_v50  ;;  %v1140_v56 = vpop.f32.mrb[14].mxu1  ;;  %v2711_v57 = vpop.f32.mrb[15].mxu0 }
 0x132   : > { %v1144_v58 = vpack.c.bf16 %v1140_v56, %v1137_v51  ;;  %v2719_v59 = vpop.f32.mrb[15].mxu1 }
 0x133   : > { %1085 = vst.msk [vmem:[#allocation2 + $0x18] sm:$0xff] %vm720_vm2, %v1083_v55 }
 0x134   : > { %1146 = vst.msk [vmem:[#allocation3 + $0x18] sm:$0xff] %vm720_vm2, %v1144_v58 }
 0x135 PF: > { %v2946_v60 = vld [vmem:[%s3722_s4] sm:$0xff]   ;;  %v3110_v61 = vmov 0.0   ;;  %v2947_v62 = vld [vmem:[%s3722_s4 + $0x8] sm:$0xff]   ;;  %vm3111_vm3 = vmmov 0   ;;  %vm1228_vm4 = vcmask 64512   ;;  %vm1182_vm5 = vcmask 261120  }
 0x136   : > { %2720 = vmatprep.subr.bf16.mxu0 %v3110_v61  ;;  %2728 = vmatprep.subr.bf16.mxu1 %v3110_v61  ;;  %v3422_v63 = vld [vmem:[%s3303_s13] sm:$0xff]  ;;  %v3112_v4 = vmov 0   ;;  %v2948_v11 = vld [vmem:[%s3722_s4 + $0x10] sm:$0xff]   ;;  %v2949_v12 = vld [vmem:[%s3722_s4 + $0x18] sm:$0xff]   ;;  %v1159_v13 = vlaneseq  ;;  %vm1277_vm11 = vcmask 130048   ;;  %v3113_v44 = vmov nan  }
 0x137   : > { %2721 = vmatpush3.bf16.msra.mxu0 %v2946_v60  ;;  %2724 = vmatprep.mubr.msk.bf16.mxu0 %vm3111_vm3, %v3110_v61  ;;  %v1227_v0 = vld [vmem:[#allocation2] sm:$0xff]  ;;  %v3430_v2 = vpack.c.bf16 %v3422_v63, %v3422_v63  ;;  %v1402_v42 = vld [vmem:[#allocation2 + $0x8] sm:$0xff]  ;;  %vm1522_vm15 = vcmask 1043456   ;;  %s3783_s20 = sld [smem:[#allocation28_spill]]  ;;  %s3784_s23 = sld [smem:[#allocation25_spill]] }
 0x138   : > { %2722 = vmatprep.subr.bf16.mxu0 %v3110_v61  ;;  %v1233_v1 = vsel %vm1228_vm4, %v1227_v0, 0  ;;  %2730 = vmatprep.mubr.msk.bf16.mxu1 %vm3111_vm3, %v3110_v61  ;;  %v1149_v3 = vld [vmem:[%s3308_s8] sm:$0xff]  ;;  %v1160_v15 = vshrl.u32 %v1159_v13, 7  ;;  %v1407_v48 = vsel %vm1228_vm4, %v1402_v42, 0  ;;  %s3785_s15 = sld [smem:[#allocation26_spill]]  ;;  %s3786_s14 = sld [smem:[#allocation27_spill]] }
 0x139   : > { %2729 = vmatpush3.bf16.xpose.msra.mxu1 %v1233_v1  ;;  %2945 = vset.pattern.permute.xlu0 %v3112_v4  ;;  %vm1151_vm6 = vcmp.gt.f32.partialorder %v1149_v3, 0.0  ;;  %v1150_v14 = vld [vmem:[%s649_s30] sm:$0x1]  ;;  %s3787_s11 = sld [smem:[#allocation29_spill]]  ;;  %s3788_s17 = sld [smem:[#allocation13_spill]] }
 0x13a   : > { %2740 = vmatprep.subr.bf16.mxu1 %v3110_v61  ;;  %v1153_v5 = vsel %vm1151_vm6, 1, %v3112_v4  ;;  %vm1152_vm7 = vcmp.gt.f32.partialorder %v1150_v14, 0.0  ;;  %v1161_v16 = vsub.s32 0, %v1160_v15  ;;  %v1297_v34 = vld [vmem:[#allocation3] sm:$0xff]  ;;  %s3789_s30 = sld [smem:[#allocation22_spill]]  ;;  %s3114_s24 = smov [#allocation6]  }
 0x13b   : > { %2723 = vmatpush3.bf16.msra.mxu0 %v2947_v62  ;;  %1155 = vperm.xlu0 %2945, %v1153_v5   ;;  %v1158_v17 = vsel %vm1152_vm7, 1, %v3112_v4  ;;  %s2984_s25 = sshll.u32 %s3114_s24, 4  ;;  %s2985_s25 = int_to_ptr.vmem [resolvable:$false] %s2984_s25 }
 0x13c   : > { %2734 = vmatprep.subr.bf16.mxu0 %v3110_v61  ;;  %v1162_v18 = vrot.slane %v1158_v17, %v1161_v16 }
 0x13e   : > { %2725 = vmatmul.mubr.msk.bf16.vlgmr.msra.gmra.mrb[0].mxu0 %vm1182_vm5, %v3430_v2  ;;  %vm1163_vm8 = vcmp.eq.s32.totalorder %v1162_v18, 1 }
 0x13f   : > { %2736 = vmatprep.mubr.msk.bf16.mxu0 %vm3111_vm3, %v3110_v61  ;;  %2735 = vmatpush3.bf16.msra.mxu0 %v1297_v34  ;;  %s2583_s29 = sshll.u32 %s3788_s17, 3 }
 0x140   : > { %2748 = vmatprep.subr.bf16.mxu0 %v3110_v61  ;;  %s2304_s1 = sadd.s32 %s3090_s27, %s2583_s29  ;;  %s2278_s21 = scalar_lea.sflag [#allocation7], %s3789_s30 }
 0x141   : > { %s2584_s22 = sshll.u32 %s2304_s1, 7 }
 0x1ba   : > { %v1156_v19 = vpop.permute.xlu0 %1155 }
 0x1bb   : > { %vm1157_vm9 = vcmp.eq.s32.totalorder %v1156_v19, 1 }
 0x1bc   : > { %vm1164_vm10 = vmor %vm1157_vm9, %vm1163_vm8 }
 0x1bd   : > { %v3460_v20 = vsel %vm1164_vm10, -inf, %v3110_v61 }
 0x211   : > { %v1220_v6 = vpop.f32.mrb[0].mxu0 }
 0x212   : > { %v1226_v7 = vpack.c.bf16 %v1220_v6, %v1220_v6  ;;  %v2726_v8 = vpop.f32.mrb[1].mxu0  ;;  %v1472_v6 = vld [vmem:[#allocation3 + $0x8] sm:$0xff] }
 0x213   : > { %v1223_v9 = vpop.f32.mrb[2].mxu0 }
 0x214   : > { %v2727_v10 = vpop.f32.mrb[3].mxu0  ;;  %2731 = vmatmul.mubr.msk.bf16.vlgmr.msra.gmra.mrb[0].mxu1 %vm1228_vm4, %v1226_v7  ;;  %v2538_v7 = vld [vmem:[%s3725_s7 + $0x4] sm:$0xf] }
 0x215   : > { %2744 = vmatprep.mubr.msk.bf16.mxu1 %vm3111_vm3, %v3110_v61  ;;  %2741 = vmatpush3.bf16.msra.mxu1 %v2948_v11  ;;  %v1524_v8 = vsel %vm1522_vm15, %v2538_v7, 0  ;;  %v2953_v7 = vld [vmem:[%s3722_s4 + $0x38] sm:$0xff]  }
 0x216   : > { %2742 = vmatprep.subr.bf16.mxu1 %v3110_v61 }
 0x219   : > { %2743 = vmatpush3.bf16.msra.mxu1 %v2949_v12  ;;  %v1342_v12 = vld [vmem:[%s3725_s7] sm:$0xf] }
 0x21a   : > { %2754 = vmatprep.subr.bf16.mxu1 %v3110_v61  ;;  %v1570_v17 = vsel %vm1522_vm15, %v1342_v12, 0 }
 0x21c   : > { %2745 = vmatmul.mubr.msk.bf16.vlgmr.msra.gmra.mrb[4].mxu1 %vm1182_vm5, %v3430_v2 }
 0x21d   : > { %2756 = vmatprep.mubr.msk.bf16.mxu1 %vm3111_vm3, %v3110_v61  ;;  %2755 = vmatpush3.bf16.msra.mxu1 %v1472_v6 }
 0x21e   : > { %2766 = vmatprep.subr.bf16.mxu1 %v3110_v61 }
 0x2e7   : > { %v1269_v21 = vpop.f32.mrb[0].mxu1 }
 0x2e8   : > { %v1275_v22 = vmul.f32 0.35355338, %v1269_v21  ;;  %v2732_v23 = vpop.f32.mrb[1].mxu1  ;;  %v2950_v21 = vld [vmem:[%s3722_s4 + $0x20] sm:$0xff]  }
 0x2e9   : > { %v1272_v24 = vpop.f32.mrb[2].mxu1 }
 0x2ea   : > { %v2733_v25 = vpop.f32.mrb[3].mxu1  ;;  %v1276_v26 = vadd.f32 %v1275_v22, %v3460_v20 }
 0x2ec   : > { %v1278_v27 = vsel %vm1277_vm11, %v1276_v26, -inf }
 0x2ed   : > { %1279 = vmax.xlane.f32.xlu0 %v1278_v27 }
 0x2ef   : > { %v1394_v35 = vpop.f32.mrb[4].mxu1 }
 0x2f0   : > { %v2746_v36 = vpop.f32.mrb[5].mxu1  ;;  %v1400_v49 = vpack.c.bf16 %v1394_v35, %v1394_v35 }
 0x2f1   : > { %v1397_v37 = vpop.f32.mrb[6].mxu1 }
 0x2f2   : > { %v2747_v38 = vpop.f32.mrb[7].mxu1 }
 0x37a   : > { %v1280_v28 = vpop.xlane.xlu0 %1279 }
 0x37b   : > { %vm1281_vm12 = vcmp.eq.f32.partialorder %v1280_v28, -inf }
 0x37c   : > { %v1282_v29 = vsel %vm1281_vm12, 0.0, %v1280_v28 }
 0x37d   : > { %v1283_v30 = vsub.f32 %v1276_v26, %v1282_v29  ;;  %v2951_v26 = vld [vmem:[%s3722_s4 + $0x28] sm:$0xff]  }
 0x37f   : > { %v1284_v31 = vmul.f32 1.442695, %v1283_v30 }
 0x381   : > { %2960 = vpow2.f32 %v1284_v31  ;;  %v1671_v31 = vld [vmem:[#allocation2 + $0x10] sm:$0xff] }
 0x38b   : > { %v2961_v32 = vpop.eup %2960 }
 0x38c   : > { %v1286_v33 = vsel %vm1277_vm11, %v2961_v32, 0.0 }
 0x38d   : > { %1287 = vadd.xlane.f32.xlu1 %v1286_v33 }
 0x41a   : > { %v1288_v39 = vpop.xlane.xlu1 %1287 }
 0x41b   : > { %2962 = vrcp.f32 %v1288_v39  ;;  %vm1289_vm13 = vcmp.gt.f32.partialorder %v1288_v39, 0.0 }
 0x41c   : > { %v1293_v45 = vsel %vm1289_vm13, 0.0, %v3113_v44 }
 0x425   : > { %v2963_v40 = vpop.eup %2962 }
 0x426   : > { %v1291_v41 = vsel %vm1289_vm13, %v2963_v40, 0.0 }
 0x427   : > { %v1292_v43 = vmul.f32 %v2961_v32, %v1291_v41  ;;  %v1676_v32 = vsel %vm1228_vm4, %v1671_v31, 0 }
 0x429   : > { %v1294_v46 = vadd.f32 %v1293_v45, %v1292_v43  ;;  %v1296_v47 = vpack.c.bf16 %v1292_v43, %v1292_v43 }
 0x42b   : > { %1295 = vst.msk [vmem:[%s3312_s0] sm:$0xff] %vm1277_vm11, %v1294_v46  ;;  %2737 = vmatmul.mubr.msk.bf16.vlgmr.msra.gmra.mrb[4].mxu0 %vm1277_vm11, %v1296_v47 }
 0x42c   : > { %2749 = vmatpush3.bf16.xpose.msra.mxu0 %v1407_v48  ;;  %2750 = vmatprep.mubr.msk.bf16.mxu0 %vm3111_vm3, %v3110_v61 }
 0x42d   : > { %2760 = vmatprep.subr.bf16.mxu0 %v3110_v61 }
 0x433   : > { %2751 = vmatmul.mubr.msk.bf16.vlgmr.msra.gmra.mrb[8].mxu0 %vm1228_vm4, %v1400_v49 }
 0x434   : > { %2762 = vmatprep.mubr.msk.bf16.mxu0 %vm3111_vm3, %v3110_v61  ;;  %2761 = vmatpush3.bf16.msra.mxu0 %v1524_v8  ;;  %v1894_v8 = vld [vmem:[#allocation2 + $0x18] sm:$0xff] }
 0x435   : > { %2772 = vmatprep.subr.bf16.mxu0 %v3110_v61  ;;  %v1899_v12 = vsel %vm1228_vm4, %v1894_v8, 0 }
 0x4fe   : > { %v1335_v50 = vpop.f32.mrb[4].mxu0 }
 0x4ff   : > { %v2738_v51 = vpop.f32.mrb[5].mxu0  ;;  %v1341_v18 = vpack.c.bf16 %v1335_v50, %v1335_v50 }
 0x500   : > { %v1338_v52 = vpop.f32.mrb[6].mxu0 }
 0x501   : > { %v2739_v53 = vpop.f32.mrb[7].mxu0 }
 0x506   : > { %v1443_v54 = vpop.f32.mrb[8].mxu0 }
 0x507   : > { %v1449_v55 = vmul.f32 0.35355338, %v1443_v54  ;;  %v2752_v56 = vpop.f32.mrb[9].mxu0 }
 0x508   : > { %v1446_v57 = vpop.f32.mrb[10].mxu0 }
 0x509   : > { %v2753_v58 = vpop.f32.mrb[11].mxu0  ;;  %v1450_v59 = vadd.f32 %v1449_v55, %v3460_v20  ;;  %v1741_v57 = vld [vmem:[#allocation3 + $0x10] sm:$0xff] }
 0x50a   : > { %v2551_v58 = vld [vmem:[%s3725_s7 + $0x8] sm:$0xf] }
 0x50b   : > { %v1451_v60 = vsel %vm1277_vm11, %v1450_v59, -inf }
 0x50c   : > { %1452 = vmax.xlane.f32.xlu1 %v1451_v60 }
 0x599   : > { %v1453_v62 = vpop.xlane.xlu1 %1452 }
 0x59a   : > { %vm1454_vm14 = vcmp.eq.f32.partialorder %v1453_v62, -inf }
 0x59b   : > { %v1455_v0 = vsel %vm1454_vm14, 0.0, %v1453_v62 }
 0x59c   : > { %v1456_v1 = vsub.f32 %v1450_v59, %v1455_v0  ;;  %v1792_v59 = vsel %vm1522_vm15, %v2551_v58, 0 }
 0x59e   : > { %v1457_v3 = vmul.f32 1.442695, %v1456_v1 }
 0x5a0   : > { %2964 = vpow2.f32 %v1457_v3 }
 0x5aa   : > { %v2965_v4 = vpop.eup %2964 }
 0x5ab   : > { %v1459_v5 = vsel %vm1277_vm11, %v2965_v4, 0.0 }
 0x5ac   : > { %1460 = vadd.xlane.f32.xlu1 %v1459_v5 }
 0x639   : > { %v1461_v9 = vpop.xlane.xlu1 %1460 }
 0x63a   : > { %2966 = vrcp.f32 %v1461_v9  ;;  %vm1462_vm0 = vcmp.gt.f32.partialorder %v1461_v9, 0.0 }
 0x63b   : > { %v1466_v14 = vsel %vm1462_vm0, 0.0, %v3113_v44 }
 0x644   : > { %v2967_v10 = vpop.eup %2966 }
 0x645   : > { %v1464_v11 = vsel %vm1462_vm0, %v2967_v10, 0.0 }
 0x646   : > { %v1465_v13 = vmul.f32 %v2965_v4, %v1464_v11  ;;  %v2952_v4 = vld [vmem:[%s3722_s4 + $0x30] sm:$0xff]  }
 0x648   : > { %v1467_v15 = vadd.f32 %v1466_v14, %v1465_v13  ;;  %v1470_v16 = vpack.c.bf16 %v1465_v13, %v1465_v13 }
 0x64a   : > { %2536 = vst.msk [vmem:[%s3312_s0 + $0x8] sm:$0xff] %vm1277_vm11, %v1467_v15  ;;  %2757 = vmatmul.mubr.msk.bf16.vlgmr.msra.gmra.mrb[8].mxu1 %vm1277_vm11, %v1470_v16 }
 0x64b   : > { %2767 = vmatpush3.bf16.msra.mxu1 %v1570_v17  ;;  %2768 = vmatprep.mubr.msk.bf16.mxu1 %vm3111_vm3, %v3110_v61 }
 0x64c   : > { %2780 = vmatprep.subr.bf16.mxu1 %v3110_v61 }
 0x652   : > { %2769 = vmatmul.mubr.msk.bf16.vlgmr.msra.gmra.mrb[12].mxu1 %vm1228_vm4, %v1341_v18 }
 0x653   : > { %2782 = vmatprep.mubr.msk.bf16.mxu1 %vm3111_vm3, %v3110_v61 }
 0x654   : > { %2781 = vmatpush3.bf16.xpose.msra.mxu1 %v1676_v32 }
 0x655   : > { %2792 = vmatprep.subr.bf16.mxu1 %v3110_v61 }
 0x71d   : > { %v1510_v19 = vpop.f32.mrb[8].mxu1 }
 0x71e   : > { %v1516_v22 = vpack.c.bf16 %v1510_v19, %v1510_v19  ;;  %v2758_v23 = vpop.f32.mrb[9].mxu1 }
 0x71f   : > { %v1513_v24 = vpop.f32.mrb[10].mxu1 }
 0x720   : > { %v2759_v25 = vpop.f32.mrb[11].mxu1  ;;  %2763 = vmatmul.mubr.msk.bf16.vlgmr.msra.gmra.mrb[12].mxu0 %vm1228_vm4, %v1516_v22 }
 0x721   : > { %2773 = vmatpush3.bf16.msra.mxu0 %v2950_v21  ;;  %2776 = vmatprep.mubr.msk.bf16.mxu0 %vm3111_vm3, %v3110_v61 }
 0x722   : > { %2774 = vmatprep.subr.bf16.mxu0 %v3110_v61 }
 0x725   : > { %2775 = vmatpush3.bf16.msra.mxu0 %v2951_v26  ;;  %v1606_v27 = vpop.f32.mrb[12].mxu1 }
 0x726   : > { %v2770_v28 = vpop.f32.mrb[13].mxu1  ;;  %2786 = vmatprep.subr.bf16.mxu0 %v3110_v61 }
 0x727   : > { %v1609_v29 = vpop.f32.mrb[14].mxu1 }
 0x728   : > { %v2771_v30 = vpop.f32.mrb[15].mxu1  ;;  %2777 = vmatmul.mubr.msk.bf16.vlgmr.msra.gmra.mrb[16].mxu0 %vm1182_vm5, %v3430_v2 }
 0x729   : > { %2788 = vmatprep.mubr.msk.bf16.mxu0 %vm3111_vm3, %v3110_v61  ;;  %2787 = vmatpush3.bf16.msra.mxu0 %v1741_v57 }
 0x72a   : > { %2798 = vmatprep.subr.bf16.mxu0 %v3110_v61 }
 0x7f3   : > { %v1560_v33 = vpop.f32.mrb[12].mxu0 }
 0x7f4   : > { %v3517_v34 = vadd.f32 %v1606_v27, %v1560_v33  ;;  %v2764_v35 = vpop.f32.mrb[13].mxu0 }
 0x7f5   : > { %v1563_v36 = vpop.f32.mrb[14].mxu0 }
 0x7f6   : > { %v2765_v37 = vpop.f32.mrb[15].mxu0 }
 0x7fb   : > { %v1663_v38 = vpop.f32.mrb[16].mxu0 }
 0x7fc   : > { %v1669_v39 = vpack.c.bf16 %v1663_v38, %v1663_v38  ;;  %v2778_v40 = vpop.f32.mrb[17].mxu0  ;;  %v1964_v38 = vld [vmem:[#allocation3 + $0x18] sm:$0xff] }
 0x7fd   : > { %v1666_v41 = vpop.f32.mrb[18].mxu0 }
 0x7fe   : > { %v2779_v42 = vpop.f32.mrb[19].mxu0  ;;  %2783 = vmatmul.mubr.msk.bf16.vlgmr.msra.gmra.mrb[16].mxu1 %vm1228_vm4, %v1669_v39 }
 0x7ff   : > { %2794 = vmatprep.mubr.msk.bf16.mxu1 %vm3111_vm3, %v3110_v61  ;;  %2793 = vmatpush3.bf16.msra.mxu1 %v1792_v59 }
 0x800   : > { %2806 = vmatprep.subr.bf16.mxu1 %v3110_v61 }
 0x8d1   : > { %v1712_v43 = vpop.f32.mrb[16].mxu1 }
 0x8d2   : > { %v1718_v45 = vmul.f32 0.35355338, %v1712_v43  ;;  %v2784_v46 = vpop.f32.mrb[17].mxu1 }
 0x8d3   : > { %v1715_v47 = vpop.f32.mrb[18].mxu1 }
 0x8d4   : > { %v2785_v48 = vpop.f32.mrb[19].mxu1  ;;  %v1719_v49 = vadd.f32 %v1718_v45, %v3460_v20 }
 0x8d6   : > { %v1720_v50 = vsel %vm1277_vm11, %v1719_v49, -inf }
 0x8d7   : > { %1721 = vmax.xlane.f32.xlu1 %v1720_v50 }
 0x964   : > { %v1722_v51 = vpop.xlane.xlu1 %1721 }
 0x965   : > { %vm1723_vm1 = vcmp.eq.f32.partialorder %v1722_v51, -inf }
 0x966   : > { %v1724_v52 = vsel %vm1723_vm1, 0.0, %v1722_v51 }
 0x967   : > { %v1725_v53 = vsub.f32 %v1719_v49, %v1724_v52 }
 0x969   : > { %v1726_v54 = vmul.f32 1.442695, %v1725_v53 }
 0x96b   : > { %2968 = vpow2.f32 %v1726_v54 }
 0x975   : > { %v2969_v55 = vpop.eup %2968 }
 0x976   : > { %v1728_v56 = vsel %vm1277_vm11, %v2969_v55, 0.0 }
 0x977   : > { %1729 = vadd.xlane.f32.xlu1 %v1728_v56 }
 0xa04   : > { %v1730_v60 = vpop.xlane.xlu1 %1729 }
 0xa05   : > { %2970 = vrcp.f32 %v1730_v60  ;;  %vm1731_vm2 = vcmp.gt.f32.partialorder %v1730_v60, 0.0 }
 0xa06   : > { %v1735_v3 = vsel %vm1731_vm2, 0.0, %v3113_v44 }
 0xa0f   : > { %v2971_v62 = vpop.eup %2970 }
 0xa10   : > { %v1733_v0 = vsel %vm1731_vm2, %v2971_v62, 0.0 }
 0xa11   : > { %v1734_v1 = vmul.f32 %v2969_v55, %v1733_v0 }
 0xa13   : > { %v1736_v5 = vadd.f32 %v1735_v3, %v1734_v1  ;;  %v1739_v6 = vpack.c.bf16 %v1734_v1, %v1734_v1  ;;  %v2954_v3 = vld [vmem:[%s3728_s10] sm:$0xff]  }
 0xa15   : > { %2549 = vst.msk [vmem:[%s3312_s0 + $0x10] sm:$0xff] %vm1277_vm11, %v1736_v5  ;;  %2789 = vmatmul.mubr.msk.bf16.vlgmr.msra.gmra.mrb[20].mxu0 %vm1277_vm11, %v1739_v6  ;;  %v2957_v5 = vld [vmem:[%s3783_s20 + $0x8] sm:$0xff]  }
 0xa16   : > { %2799 = vmatpush3.bf16.msra.mxu0 %v2952_v4  ;;  %2802 = vmatprep.mubr.msk.bf16.mxu0 %vm3111_vm3, %v3110_v61  ;;  %v2956_v4 = vld [vmem:[%s3783_s20] sm:$0xff]  }
 0xa17   : > { %2800 = vmatprep.subr.bf16.mxu0 %v3110_v61 }
 0xa1a   : > { %2801 = vmatpush3.bf16.msra.mxu0 %v2953_v7 }
 0xa1b   : > { %2812 = vmatprep.subr.bf16.mxu0 %v3110_v61 }
 0xa1d   : > { %2803 = vmatmul.mubr.msk.bf16.vlgmr.msra.gmra.mrb[24].mxu0 %vm1182_vm5, %v3430_v2 }
 0xa1e   : > { %2814 = vmatprep.mubr.msk.bf16.mxu0 %vm3111_vm3, %v3110_v61  ;;  %2813 = vmatpush3.bf16.msra.mxu0 %v1964_v38 }
 0xa1f   : > { %2824 = vmatprep.subr.bf16.mxu0 %v3110_v61 }
 0xae8   : > { %v1779_v9 = vpop.f32.mrb[20].mxu0 }
 0xae9   : > { %v1785_v10 = vpack.c.bf16 %v1779_v9, %v1779_v9  ;;  %v2790_v11 = vpop.f32.mrb[21].mxu0 }
 0xaea   : > { %v1782_v13 = vpop.f32.mrb[22].mxu0 }
 0xaeb   : > { %v2791_v14 = vpop.f32.mrb[23].mxu0  ;;  %2795 = vmatmul.mubr.msk.bf16.vlgmr.msra.gmra.mrb[20].mxu1 %vm1228_vm4, %v1785_v10  ;;  %v2565_v10 = vld [vmem:[%s3784_s23] ss:$0 sm:$0xff]  ;;  %s2307_s23 = sshll.u32 %s3312_s0, 4  ;;  %s3624_s23 = int_to_ptr.vmem [resolvable:$true] %s2307_s23 }
 0xaec   : > { %2807 = vmatpush3.bf16.xpose.msra.mxu1 %v1899_v12  ;;  %2808 = vmatprep.mubr.msk.bf16.mxu1 %vm3111_vm3, %v3110_v61  ;;  %v2566_v12 = vld [vmem:[%s3785_s15] ss:$0 sm:$0xff]  ;;  %s3791_s15 = sld [smem:[#allocation33_spill]]  ;;  %s2980_s18 = scalar_lea.vmem %s3624_s23, 512 }
 0xaed   : > { %2818 = vmatprep.subr.bf16.mxu1 %v3110_v61  ;;  %p2981_p1 = scmp.ne.s32.totalorder %s3624_s23, %s2980_s18  ;;  %p2987_p5 = scmp.lt.s32.totalorder %s3624_s23, %s2985_s25 }
 0xaef   : > { %p2982_p2 = pnand %p2981_p1, %p3260_p3 }
 0xaf0   : > { %v1886_v2 = vpop.f32.mrb[24].mxu0 }
 0xaf1   : > { %v1892_v15 = vpack.c.bf16 %v1886_v2, %v1886_v2  ;;  %v2804_v16 = vpop.f32.mrb[25].mxu0  ;;  %p2983_p4 = pneg %p2982_p2 }
 0xaf2   : > { %v1889_v17 = vpop.f32.mrb[26].mxu0  ;;  %v2959_v16 = vld [vmem:[%s3783_s20 + $0x18] sm:$0xff]   ;;  %s3622_s16 = scalar_lea.hbm %s3791_s15, %s2584_s22 }
 0xaf3   : > { %v2805_v18 = vpop.f32.mrb[27].mxu0  ;;  %2809 = vmatmul.mubr.msk.bf16.vlgmr.msra.gmra.mrb[24].mxu1 %vm1228_vm4, %v1892_v15  ;;  %v2958_v15 = vld [vmem:[%s3783_s20 + $0x10] sm:$0xff]   ;;  %v2567_v17 = vld [vmem:[%s3786_s14] ss:$0 sm:$0xff] }
 0xaf4   : > { %2820 = vmatprep.mubr.msk.bf16.mxu1 %vm3111_vm3, %v3110_v61 }
 0xbbe   : > { %v1828_v19 = vpop.f32.mrb[20].mxu1 }
 0xbbf   : > { %v1834_v21 = vadd.f32 %v1828_v19, %v3517_v34  ;;  %v2796_v22 = vpop.f32.mrb[21].mxu1 }
 0xbc0   : > { %v1831_v23 = vpop.f32.mrb[22].mxu1 }
 0xbc1   : > { %v2797_v24 = vpop.f32.mrb[23].mxu1 }
 0xbc6   : > { %v1935_v25 = vpop.f32.mrb[24].mxu1 }
 0xbc7   : > { %v1941_v26 = vmul.f32 0.35355338, %v1935_v25  ;;  %v2810_v27 = vpop.f32.mrb[25].mxu1 }
 0xbc8   : > { %v1938_v28 = vpop.f32.mrb[26].mxu1 }
 0xbc9   : > { %v2811_v29 = vpop.f32.mrb[27].mxu1  ;;  %v1942_v30 = vadd.f32 %v1941_v26, %v3460_v20  ;;  %v2563_v20 = vld [vmem:[%s3725_s7 + $0xc] sm:$0xf] }
 0xbca   : > { %v2015_v39 = vsel %vm1522_vm15, %v2563_v20, 0 }
 0xbcb   : > { %v1943_v31 = vsel %vm1277_vm11, %v1942_v30, -inf  ;;  %2819 = vmatpush3.bf16.msra.mxu1 %v2015_v39 }
 0xbcc   : > { %1944 = vmax.xlane.f32.xlu1 %v1943_v31  ;;  %2832 = vmatprep.subr.bf16.mxu1 %v3110_v61 }
 0xc59   : > { %v1945_v32 = vpop.xlane.xlu1 %1944 }
 0xc5a   : > { %vm1946_vm6 = vcmp.eq.f32.partialorder %v1945_v32, -inf }
 0xc5b   : > { %v1947_v33 = vsel %vm1946_vm6, 0.0, %v1945_v32 }
 0xc5c   : > { %v1948_v35 = vsub.f32 %v1942_v30, %v1947_v33 }
 0xc5e   : > { %v1949_v36 = vmul.f32 1.442695, %v1948_v35 }
 0xc60   : > { %2972 = vpow2.f32 %v1949_v36 }
 0xc6a   : > { %v2973_v34 = vpop.eup %2972 }
 0xc6b   : > { %v1951_v37 = vsel %vm1277_vm11, %v2973_v34, 0.0 }
 0xc6c   : > { %1952 = vadd.xlane.f32.xlu1 %v1951_v37 }
 0xcf9   : > { %v1953_v40 = vpop.xlane.xlu1 %1952 }
 0xcfa   : > { %2974 = vrcp.f32 %v1953_v40  ;;  %vm1954_vm7 = vcmp.gt.f32.partialorder %v1953_v40, 0.0 }
 0xcfb   : > { %v1958_v45 = vsel %vm1954_vm7, 0.0, %v3113_v44 }
 0xd04   : > { %v2975_v41 = vpop.eup %2974 }
 0xd05   : > { %v1956_v42 = vsel %vm1954_vm7, %v2975_v41, 0.0 }
 0xd06   : > { %v1957_v43 = vmul.f32 %v2973_v34, %v1956_v42 }
 0xd08   : > { %v1959_v46 = vadd.f32 %v1958_v45, %v1957_v43  ;;  %v1962_v47 = vpack.c.bf16 %v1957_v43, %v1957_v43 }
 0xd0a   : > { %2561 = vst.msk [vmem:[%s3312_s0 + $0x18] sm:$0xff] %vm1277_vm11, %v1959_v46  ;;  %2815 = vmatmul.mubr.msk.bf16.vlgmr.msra.gmra.mrb[28].mxu0 %vm1277_vm11, %v1962_v47  ;;  %s2986_s0 = scalar_lea.vmem %s2985_s25, 1024 }
 0xd0b   : > { %2828 = vmatprep.mubr.msk.bf16.mxu0 %vm3111_vm3, %v3110_v61  ;;  %2825 = vmatpush3.bf16.msra.mxu0 %v2954_v3  ;;  %p2988_p6 = scmp.lt.s32.totalorder %s2986_s0, %s2980_s18 }
 0xd0c   : > { %2826 = vmatprep.subr.bf16.mxu0 %v3110_v61 }
 0xd0d   : > { %p2989_p7 = por %p2988_p6, %p2987_p5 }
 0xd0f   : > { %p2990_p9 = pnand %p2989_p7, %p2983_p4 }
 0xddd   : > { %v2002_v48 = vpop.f32.mrb[28].mxu0 }
 0xdde   : > { %v2008_v49 = vpack.c.bf16 %v2002_v48, %v2002_v48  ;;  %v2816_v50 = vpop.f32.mrb[29].mxu0 }
 0xddf   : > { %v2005_v51 = vpop.f32.mrb[30].mxu0 }
 0xde0   : > { %v2817_v52 = vpop.f32.mrb[31].mxu0  ;;  %2821 = vmatmul.mubr.msk.bf16.vlgmr.msra.gmra.mrb[28].mxu1 %vm1228_vm4, %v2008_v49 }
 0xde1   : > { %2840 = vmatprep.mubr.msk.bf16.mxu1 %vm3111_vm3, %v3110_v61  ;;  %2833 = vmatpush3.bf16.msra.mxu1 %v2956_v4  ;;  %vm2197_vm3 = vcmask 523264  }
 0xde2   : > { %2834 = vmatprep.subr.bf16.mxu1 %v3110_v61 }
 0xde5   : > { %2835 = vmatpush3.bf16.msra.mxu1 %v2957_v5 }
 0xde6   : > { %2836 = vmatprep.subr.bf16.mxu1 %v3110_v61 }
 0xde9   : > { %2837 = vmatpush3.bf16.msra.mxu1 %v2958_v15 }
 0xdea   : > { %2838 = vmatprep.subr.bf16.mxu1 %v3110_v61  ;;  %v2571_v61 = vld [vmem:[%s3787_s11] ss:$0 sm:$0xff] }
 0xded   : > { %2839 = vmatpush3.bf16.msra.mxu1 %v2959_v16 }
 0xeb3   : > { %v2051_v44 = vpop.f32.mrb[28].mxu1 }
 0xeb4   : > { %v2057_v53 = vadd.f32 %v2051_v44, %v1834_v21  ;;  %v2822_v54 = vpop.f32.mrb[29].mxu1 }
 0xeb5   : > { %v2054_v55 = vpop.f32.mrb[30].mxu1 }
 0xeb6   : > { %v2823_v56 = vpop.f32.mrb[31].mxu1  ;;  %v2058_v57 = vadd.f32 %v2057_v53, %v3422_v63  ;;  %v2955_v63 = vld [vmem:[%s3728_s10 + $0x8] sm:$0xff]  }
 0xeb7   : > { %2827 = vmatpush3.bf16.msra.mxu0 %v2955_v63 }
 0xeb8   : > { %v2059_v58 = vsel %vm1182_vm5, %v2058_v57, 0.0 }
 0xeb9   : > { %2060 = vadd.xlane.f32.xlu1 %v2059_v58 }
 0xf46   : > { %v2061_v59 = vpop.xlane.xlu1 %2060 }
 0xf47   : > { %v2063_v60 = vmul.f32 0.03125, %v2061_v59 }
 0xf49   : > { %v2064_v62 = vsub.f32 %v2058_v57, %v2063_v60 }
 0xf4b   : > { %v2065_v0 = vmul.f32 %v2064_v62, %v2064_v62 }
 0xf4d   : > { %v2066_v1 = vsel %vm1182_vm5, %v2065_v0, 0.0 }
 0xf4e   : > { %2067 = vadd.xlane.f32.xlu1 %v2066_v1 }
 0xfdb   : > { %v2068_v6 = vpop.xlane.xlu1 %2067 }
 0xfdc   : > { %v2069_v7 = vmul.f32 0.03125, %v2068_v6 }
 0xfde   : > { %v2070_v8 = vadd.f32 1e-05, %v2069_v7 }
 0xfe0   : > { %2976 = vrsqrt.f32 %v2070_v8 }
 0xfea   : > { %v2977_v9 = vpop.eup %2976 }
 0xfeb   : > { %v2072_v11 = vmul.f32 %v2977_v9, %v2064_v62 }
 0xfed   : > { %v2080_v13 = vmul.f32 %v2565_v10, %v2072_v11 }
 0xfef   : > { %v2088_v14 = vadd.f32 %v2566_v12, %v2080_v13 }
 0xff1   : > { %v2089_v2 = vpack.c.bf16 %v2088_v14, %v2088_v14 }
 0xff3   : > { %2829 = vmatmul.mubr.msk.bf16.vlgmr.msra.gmra.mrb[32].mxu0 %vm1182_vm5, %v2089_v2 }
0x10c6   : > { %v2150_v18 = vpop.f32.mrb[32].mxu0 }
0x10c7   : > { %v2151_v19 = vadd.f32 %v2567_v17, %v2150_v18  ;;  %v2830_v21 = vpop.f32.mrb[33].mxu0 }
0x10c8   : > { %v2153_v22 = vpop.f32.mrb[34].mxu0 }
0x10c9   : > { %v2156_v23 = vmax.f32 %v2151_v19, 0.0  ;;  %v2831_v24 = vpop.f32.mrb[35].mxu0 }
0x10cb   : > { %v2157_v25 = vpack.c.bf16 %v2156_v23, %v2156_v23 }
0x10cd   : > { %2841 = vmatmul.mubr.msk.bf16.vlgmr.msra.gmra.mrb[32].mxu1 %vm2197_vm3, %v2157_v25 }
0x11a0   : > { %v2235_v26 = vpop.f32.mrb[32].mxu1 }
0x11a1   : > { %v2236_v27 = vadd.f32 %v2571_v61, %v2235_v26  ;;  %v2842_v28 = vpop.f32.mrb[33].mxu1 }
0x11a2   : > { %v2238_v29 = vpop.f32.mrb[34].mxu1 }
0x11a3   : > { %v2843_v30 = vpop.f32.mrb[35].mxu1  ;;  %v2241_v31 = vadd.f32 %v2236_v27, %v2088_v14 }
0x11a5   : > { %v2242_v32 = vsel %vm1182_vm5, %v2241_v31, 0.0 }
0x11a6   : > { %2243 = vadd.xlane.f32.xlu0 %v2242_v32 }
0x1233   : > { %v2244_v33 = vpop.xlane.xlu0 %2243 }
0x1234   : > { %v2245_v35 = vmul.f32 0.03125, %v2244_v33 }
0x1236   : > { %v2246_v36 = vsub.f32 %v2241_v31, %v2245_v35 }
0x1238   : > { %v2247_v34 = vmul.f32 %v2246_v36, %v2246_v36 }
0x123a   : > { %v2248_v37 = vsel %vm1182_vm5, %v2247_v34, 0.0 }
0x123b   : > { %2249 = vadd.xlane.f32.xlu1 %v2248_v37 }
0x123c   : > { %2993 = shalt.err (!%p2990_p9)
}
0x123d   : > { %s2994_s13 = scalar_lea.hbm %s3622_s16, 512  ;;  %s2998_s9 = scalar_lea.hbm %s3791_s15, 2048 }
0x123e   : > { %p2995_p10 = scmp.ne.s32.totalorder %s3622_s16, %s2994_s13  ;;  %p2999_p13 = scmp.lt.u32.totalorder %s3622_s16, %s3791_s15 }
0x123f   : > { %p3000_p0 = scmp.lt.u32.totalorder %s2998_s9, %s2994_s13  ;;  %p3002_p2 = scmp.lt.u32.totalorder %s2994_s13, %s3622_s16 }
0x1240   : > { %p2996_p11 = pnand %p2995_p10, %p3260_p3 }
0x1241   : > { %p3001_p1 = por %p3000_p0, %p2999_p13 }
0x1242   : > { %p2997_p12 = pneg %p2996_p11 }
0x1243   : > { %p3003_p4 = por %p3002_p2, %p3001_p1 }
0x1245   : > { %p3004_p5 = pnand %p3003_p4, %p2997_p12 }
0x1247   : > { %3007 = shalt.err (!%p3004_p5)
}
0x1248   : > { %s3115_s1 = smov 128   ;;  %s3116_s22 = smov 256  }
0x1249   : > { %s3117_s19 = smov 8   ;;  %s2581_s26 = sshll.u32 %s3788_s17, 1 }
0x124a   : > { %2845 = dma.vmem_to_hbm [thread:$0]  (%p3260_p3), %s3624_s23, 512, %s3622_s16, %s2278_s21, %s3115_s1, %s3116_s22, %s3117_s19  }
0x124b   : > { %s2289_s18 = sadd.s32 %s3090_s27, %s2581_s26  ;;  %s3792_s0 = sld [smem:[#allocation30_spill]] }
0x124c   : > { %s3793_s8 = sld [smem:[#allocation31_spill]]  ;;  %s2582_s23 = sshll.u32 %s2289_s18, 7 }
0x124d   : > { %s2293_s16 = sshll.u32 %s3310_s12, 4  ;;  %s3794_s11 = sld [smem:[#allocation32_spill]]  ;;  %s3664_s16 = int_to_ptr.vmem [resolvable:$true] %s2293_s16 }
0x124e   : > { %s2273_s27 = scalar_lea.sflag [#allocation5], %s3789_s30  ;;  %s3008_s29 = scalar_lea.vmem %s3664_s16, 128 }
0x124f   : > { %p3009_p6 = scmp.ne.s32.totalorder %s3664_s16, %s3008_s29  ;;  %s3118_s1 = smov [#allocation4]  }
0x1250   : > { %s3012_s22 = sshll.u32 %s3118_s1, 4  ;;  %s3013_s22 = int_to_ptr.vmem [resolvable:$false] %s3012_s22 }
0x1251   : > { %v2577_v41 = vld [vmem:[%s3792_s0] ss:$0 sm:$0xff]  ;;  %p3010_p7 = pnand %p3009_p6, %p3260_p3  ;;  %s3014_s19 = scalar_lea.vmem %s3013_s22, 256 }
0x1252   : > { %v2578_v43 = vld [vmem:[%s3793_s8] ss:$0 sm:$0xff]  ;;  %p3015_p10 = scmp.lt.s32.totalorder %s3664_s16, %s3013_s22  ;;  %p3016_p11 = scmp.lt.s32.totalorder %s3014_s19, %s3008_s29 }
0x1253   : > { %s3662_s17 = scalar_lea.hbm %s3794_s11, %s2582_s23  ;;  %p3011_p9 = pneg %p3010_p7 }
0x1254   : > { %p3017_p12 = por %p3016_p11, %p3015_p10 }
0x1256   : > { %p3018_p13 = pnand %p3017_p12, %p3011_p9 }
0x12c8   : > { %v2250_v38 = vpop.xlane.xlu1 %2249 }
0x12c9   : > { %v2251_v20 = vmul.f32 0.03125, %v2250_v38 }
0x12cb   : > { %v2252_v39 = vadd.f32 1e-05, %v2251_v20 }
0x12cd   : > { %2978 = vrsqrt.f32 %v2252_v39 }
0x12d7   : > { %v2979_v40 = vpop.eup %2978 }
0x12d8   : > { %v2254_v42 = vmul.f32 %v2979_v40, %v2246_v36 }
0x12da   : > { %v2262_v45 = vmul.f32 %v2577_v41, %v2254_v42 }
0x12dc   : > { %v2270_v46 = vadd.f32 %v2578_v43, %v2262_v45 }
0x12de   : > { %2271 = vst.msk [vmem:[%s3310_s12] sm:$0xff] %vm1182_vm5, %v2270_v46 }
0x12df   : > { %3021 = shalt.err (!%p3018_p13)
}
0x12e0   : > { %s3022_s12 = scalar_lea.hbm %s3662_s17, 128  ;;  %s3026_s18 = scalar_lea.hbm %s3794_s11, 512 }
0x12e1   : > { %p3023_p0 = scmp.ne.s32.totalorder %s3662_s17, %s3022_s12  ;;  %p3027_p4 = scmp.lt.u32.totalorder %s3662_s17, %s3794_s11 }
0x12e2   : > { %p3028_p5 = scmp.lt.u32.totalorder %s3026_s18, %s3022_s12  ;;  %p3030_p7 = scmp.lt.u32.totalorder %s3022_s12, %s3662_s17 }
0x12e3   : > { %p3024_p1 = pnand %p3023_p0, %p3260_p3 }
0x12e4   : > { %p3029_p6 = por %p3028_p5, %p3027_p4 }
0x12e5   : > { %p3025_p2 = pneg %p3024_p1 }
0x12e6   : > { %p3031_p9 = por %p3030_p7, %p3029_p6 }
0x12e8   : > { %p3032_p10 = pnand %p3031_p9, %p3025_p2 }
0x12ea   : > { %3035 = shalt.err (!%p3032_p10)
}
0x12eb   : > { %2844 = dma.vmem_to_hbm [thread:$0]  (%p3260_p3), %s3664_s16, 128, %s3662_s17, %s2273_s27  }
0x12ec PF: > { %s3795_s0 = sld [smem:[#allocation16_spill]]  ;;  %s3796_s13 = sld [smem:[#allocation10_spill]] }
0x12f2   : > { %p2855_p11 = scmp.ge.s32.totalorder %s3795_s0, 2  ;;  %s2322_s8 = sand.u32 1, %s3796_s13  }
0x12f3   : > { %s2323_s23 = scalar_lea.sflag [#allocation5], %s2322_s8 }
0x12f4   : > { %p2849_p12 = pnand %p2855_p11, %p3269_p8 }
0x12f6   : > { %3069 = dma.done.wait (!%p2849_p12), %s2323_s23, 128  }
0x12f7   : > { %3071 = vsyncadd (!%p2849_p12), %s2323_s23, 4294967168  ;;  %s2332_s21 = scalar_lea.sflag [#allocation7], %s2322_s8 }
0x12f8   : > { %3073 = dma.done.wait (!%p2849_p12), %s2332_s21, 512  }
0x12f9   : > { %3075 = vsyncadd (!%p2849_p12), %s2332_s21, 4294966784  ;;  %s34_s30 = sadd.s32 1, %s3795_s0   ;;  %s3798_s24 = sld [smem:[#allocation11_spill]] }
0x12fa   : > { %p31_p13 = scmp.ge.s32.totalorder %s34_s30, 6   ;;  %s3799_s25 = sld [smem:[#allocation12_spill]] }
0x12fb   : > { %s3800_s26 = sld [smem:[#allocation21_spill]]  ;;  %s3801_s27 = sld [smem:[#allocation14_spill]] }
0x12fc   : > { %s3802_s28 = sld [smem:[#allocation15_spill]]  ;;  %s3803_s29 = sld [smem:[#allocation17_spill]] }
0x12fd   : > { %s3804_s0 = sld [smem:[#allocation19_spill]]  ;;  %33 = sbr.rel (!%p31_p13) target bundleno = 19 (0x13), region = 176 }
0x1304   :  { %2337 = vsyncpa [#allocation5], 1 }
0x1305   :  { %2339 = vsyncpa [#allocation5 + $0x1], 1 }
0x1306   :  { %2340 = vsyncpa [#allocation7], 1 }
0x1307   :  { %2342 = vsyncpa [#allocation7 + $0x1], 1 }

</bundles_post_ra>
